<compile_context>
chip_gen: v5e
topology: v5e:2x2
jax: 0.10.0
libtpu: 0.0.40
codegen_flags: <defaults>
</compile_context>

<pallas_src>
import jax
import jax.numpy as jnp
import numpy as np
from jax.experimental import pallas as pl
from jax.experimental.pallas import tpu as pltpu

KSIZE = 3
ALPHA = 0.1  # LeakyReLU negative slope (module default)


def conv_block_pallas(x_ncdhw, w_oidhw, bias, *, compute_dtype=None):
    """x: (N, Cin, D, H, W), w: (Cout, Cin, 3, 3, 3), bias: (Cout,) -> NCDHW output.

    compute_dtype: dtype fed to the MXU (panel / weights).  jnp.bfloat16 roughly
    doubles MXU throughput and halves activation/weight bytes on v6e/v7x while the
    accumulation, bias and LeakyReLU stay in f32.
    """
    N, Cin, D, H, W = x_ncdhw.shape
    Cout = w_oidhw.shape[0]
    Dp, Hp, Wp = D + 2, H + 2, W + 2
    Lp = Hp * Wp                       # flattened *padded* spatial columns
    K = KSIZE * KSIZE * KSIZE * Cin    # folded contraction depth, order (kd, kh, kw, cin)
    out_dtype = x_ncdhw.dtype
    if compute_dtype is None:
        compute_dtype = x_ncdhw.dtype

    # ---- wrapper-side glue (XLA fuses transpose + pad + reshape into one copy) ----
    x_t = jnp.transpose(x_ncdhw, (0, 2, 1, 3, 4))                  # (N, D, Cin, H, W)
    x_p = jnp.pad(x_t, ((0, 0), (1, 1), (0, 0), (1, 1), (1, 1)))   # (N, Dp, Cin, Hp, Wp)
    x_p = x_p.reshape(N, Dp, Cin, Lp).astype(compute_dtype)
    # (Cout, Cin, kd, kh, kw) -> (Cout, kd, kh, kw, Cin) -> (Cout, 27*Cin)
    w2 = jnp.transpose(w_oidhw, (0, 2, 3, 4, 1)).reshape(Cout, K).astype(compute_dtype)
    b2 = bias.reshape(Cout, 1).astype(jnp.float32)

    def kernel(x0_ref, x1_ref, x2_ref, w_ref, b_ref, o_ref, panel_ref):
        # x{0,1,2}_ref: (1, 1, Cin, Lp)   padded depth slices d, d+1, d+2
        # w_ref:        (Cout, 27*Cin)    resident across the whole grid
        # b_ref:        (Cout, 1) f32
        # o_ref:        (1, 1, Cout, Lp)  output in padded-column space
        # panel_ref:    (27*Cin, Lp)      im2col panel scratch
        slabs = (x0_ref, x1_ref, x2_ref)
        for kd in range(KSIZE):
            src = slabs[kd]
            for kh in range(KSIZE):
                for kw in range(KSIZE):
                    s = kh * Wp + kw                       # flat lane shift of this tap
                    row0 = ((kd * KSIZE + kh) * KSIZE + kw) * Cin
                    # One lane-shifted copy per tap, sliced straight from the ref
                    # (no whole-slab value, no per-tap reshape).  The unwritten tail
                    # [Lp-s:] only contributes to padded output columns we discard.
                    # TODO(synk): realize the shift with pltpu.roll (XLU slot) and tile
                    # over H-strips for very large H*W (v7x VMEM budget).
                    panel_ref[row0:row0 + Cin, 0:Lp - s] = src[0, 0, :, s:]

        # One deep MXU contraction per (n, d): (Cout, 27*Cin) x (27*Cin, Hp*Wp).
        acc = jnp.dot(w_ref[...], panel_ref[...],
                      preferred_element_type=jnp.float32)           # (Cout, Lp) f32
        r = acc + b_ref[...]                                        # bias (lane bcast)
        r = jnp.where(r >= 0, r, ALPHA * r)                         # LeakyReLU(0.1)
        o_ref[0, 0] = r.astype(o_ref.dtype)

    # Advisory cost / VMEM hints.
    csize = jnp.dtype(compute_dtype).itemsize
    osize = jnp.dtype(out_dtype).itemsize
    flops = 2 * N * D * Cout * K * Lp
    bytes_accessed = (3 * x_p.size * csize                 # each depth slab fetched ~3x
                      + w2.size * csize + b2.size * 4
                      + N * D * Cout * Lp * osize)
    vmem_est = (2 * 3 * Cin * Lp * csize                   # 3 depth slabs, double-buffered
                + K * Lp * csize                           # panel scratch
                + 2 * Cout * Lp * osize                    # output block, double-buffered
                + Cout * K * csize + Cout * 4)             # resident weights + bias
    vmem_limit = int(min(64 * 1024 * 1024, max(32 * 1024 * 1024, 2 * vmem_est)))

    out = pl.pallas_call(
        kernel,
        out_shape=jax.ShapeDtypeStruct((N, D, Cout, Lp), out_dtype),
        grid_spec=pltpu.PrefetchScalarGridSpec(
            num_scalar_prefetch=0,
            grid=(N, D),
            in_specs=[
                # three overlapping padded depth slices (kd = 0, 1, 2)
                pl.BlockSpec((1, 1, Cin, Lp), lambda n, d: (n, d, 0, 0)),
                pl.BlockSpec((1, 1, Cin, Lp), lambda n, d: (n, d + 1, 0, 0)),
                pl.BlockSpec((1, 1, Cin, Lp), lambda n, d: (n, d + 2, 0, 0)),
                # constant index_maps -> weights / bias DMA'd once, stay resident
                pl.BlockSpec((Cout, K), lambda n, d: (0, 0)),
                pl.BlockSpec((Cout, 1), lambda n, d: (0, 0)),
            ],
            out_specs=pl.BlockSpec((1, 1, Cout, Lp), lambda n, d: (n, d, 0, 0)),
            scratch_shapes=[pltpu.VMEM((K, Lp), compute_dtype)],
        ),
        compiler_params=pltpu.CompilerParams(
            dimension_semantics=("parallel", "parallel"),
            vmem_limit_bytes=vmem_limit),
        cost_estimate=pl.CostEstimate(
            flops=flops, transcendentals=0, bytes_accessed=bytes_accessed),
    )(x_p, x_p, x_p, w2, b2)
    # TODO(synk): deduplicate the ~3x depth-slab HBM reads with a manual 3-slot ring
    # buffer (memory_space=pl.ANY + make_async_copy) once d becomes an 'arbitrary' axis.

    # Drop the padded columns and restore NCDHW (one fused XLA slice + transpose).
    out = out.reshape(N, D, Cout, Hp, Wp)[:, :, :, :H, :W]
    return jnp.transpose(out, (0, 2, 1, 3, 4))


def conv_block_ref(x_ncdhw, w_oidhw, bias):
    out = jax.lax.conv_general_dilated(
        x_ncdhw,
        w_oidhw,
        window_strides=(1, 1, 1),
        padding=[(1, 1), (1, 1), (1, 1)],
        dimension_numbers=("NCDHW", "OIDHW", "NCDHW"),
    )
    out = out + bias[None, :, None, None, None]
    return jnp.where(out >= 0, out, ALPHA * out)


if __name__ == "__main__":
    # Small shapes consistent with Conv3d(Cin=4, Cout=8, k=3, s=1, p=1).
    N, Cin, Cout, D, H, W = 2, 4, 8, 8, 16, 16

    key = jax.random.PRNGKey(0)
    kx, kwgt, kb = jax.random.split(key, 3)

    x = jax.random.normal(kx, (N, Cin, D, H, W), dtype=jnp.float32)
    # Deterministic init mimicking PyTorch Conv3d default: U(-k, k), k=1/sqrt(fan_in)
    fan_in = Cin * KSIZE * KSIZE * KSIZE
    bound = 1.0 / np.sqrt(fan_in)
    w = jax.random.uniform(
        kwgt, (Cout, Cin, KSIZE, KSIZE, KSIZE), jnp.float32, -bound, bound)
    b = jax.random.uniform(kb, (Cout,), jnp.float32, -bound, bound)

    ref = jax.block_until_ready(conv_block_ref(x, w, b))

    # f32 path: tight check against the f32 XLA reference.
    out = jax.block_until_ready(conv_block_pallas(x, w, b))
    np.testing.assert_allclose(np.asarray(out), np.asarray(ref),
                               rtol=1e-4, atol=1e-4)

    # bf16 compute path (v6e/v7x MXU / HBM win); f32 accumulate -> loose tolerance
    # against the f32 reference.
    out_bf16 = jax.block_until_ready(
        conv_block_pallas(x, w, b, compute_dtype=jnp.bfloat16))
    np.testing.assert_allclose(np.asarray(out_bf16), np.asarray(ref),
                               rtol=5e-2, atol=5e-2)

    print("KERNEL_OK")
</pallas_src>

<mosaic_0001>
module attributes {stable_mosaic.version = 11 : i64} {
  func.func @kernel(%arg0: i32, %arg1: i32, %arg2: memref<1x1x4x324xf32, #tpu.memory_space<vmem>>, %arg3: memref<1x1x4x324xf32, #tpu.memory_space<vmem>>, %arg4: memref<1x1x4x324xf32, #tpu.memory_space<vmem>>, %arg5: memref<8x108xf32, #tpu.memory_space<vmem>>, %arg6: memref<8x1xf32, #tpu.memory_space<vmem>>, %arg7: memref<1x1x8x324xf32, #tpu.memory_space<vmem>>, %arg8: memref<108x324xf32, #tpu.memory_space<vmem>>) attributes {dimension_semantics = [#tpu.dimension_semantics<parallel>, #tpu.dimension_semantics<parallel>], iteration_bounds = array<i64: 2, 8>, scalar_prefetch = 0 : i64, scratch_operands = 1 : i64, tpu.core_type = #tpu.core_type<tc>, window_params = [{transform_indices = @transform_0, window_bounds = array<i64: 1, 1, 4, 324>}, {transform_indices = @transform_1, window_bounds = array<i64: 1, 1, 4, 324>}, {transform_indices = @transform_2, window_bounds = array<i64: 1, 1, 4, 324>}, {pipeline_mode = #tpu.pipeline_mode<synchronous>, transform_indices = @transform_3, window_bounds = array<i64: 8, 108>}, {pipeline_mode = #tpu.pipeline_mode<synchronous>, transform_indices = @transform_4, window_bounds = array<i64: 8, 1>}, {transform_indices = @transform_5, window_bounds = array<i64: 1, 1, 8, 324>}]} {
    %c0 = arith.constant 0 : index
    %c0_0 = arith.constant 0 : index
    %c0_1 = arith.constant 0 : index
    %c0_2 = arith.constant 0 : index
    %0 = vector.load %arg2[%c0, %c0_0, %c0_1, %c0_2] : memref<1x1x4x324xf32, #tpu.memory_space<vmem>>, vector<1x1x4x324xf32>
    %1 = vector.shape_cast %0 : vector<1x1x4x324xf32> to vector<4x324xf32>
    %c0_3 = arith.constant 0 : index
    %c0_4 = arith.constant 0 : index
    %2 = vector.load %arg8[%c0_3, %c0_4] : memref<108x324xf32, #tpu.memory_space<vmem>>, vector<4x324xf32>
    tpu.vector_store %arg8[%c0_3, %c0_4], %1 {strides = array<i32>} : memref<108x324xf32, #tpu.memory_space<vmem>>, vector<4x324xf32>,
    %c0_5 = arith.constant 0 : index
    %c0_6 = arith.constant 0 : index
    %c0_7 = arith.constant 0 : index
    %c1 = arith.constant 1 : index
    %3 = vector.load %arg2[%c0_5, %c0_6, %c0_7, %c1] : memref<1x1x4x324xf32, #tpu.memory_space<vmem>>, vector<1x1x4x323xf32>
    %4 = vector.shape_cast %3 : vector<1x1x4x323xf32> to vector<4x323xf32>
    %c4 = arith.constant 4 : index
    %c0_8 = arith.constant 0 : index
    %5 = vector.load %arg8[%c4, %c0_8] : memref<108x324xf32, #tpu.memory_space<vmem>>, vector<4x323xf32>
    tpu.vector_store %arg8[%c4, %c0_8], %4 {strides = array<i32>} : memref<108x324xf32, #tpu.memory_space<vmem>>, vector<4x323xf32>,
    %c0_9 = arith.constant 0 : index
    %c0_10 = arith.constant 0 : index
    %c0_11 = arith.constant 0 : index
    %c2 = arith.constant 2 : index
    %6 = vector.load %arg2[%c0_9, %c0_10, %c0_11, %c2] : memref<1x1x4x324xf32, #tpu.memory_space<vmem>>, vector<1x1x4x322xf32>
    %7 = vector.shape_cast %6 : vector<1x1x4x322xf32> to vector<4x322xf32>
    %c8 = arith.constant 8 : index
    %c0_12 = arith.constant 0 : index
    %8 = vector.load %arg8[%c8, %c0_12] : memref<108x324xf32, #tpu.memory_space<vmem>>, vector<4x322xf32>
    tpu.vector_store %arg8[%c8, %c0_12], %7 {strides = array<i32>} : memref<108x324xf32, #tpu.memory_space<vmem>>, vector<4x322xf32>,
    %c0_13 = arith.constant 0 : index
    %c0_14 = arith.constant 0 : index
    %c0_15 = arith.constant 0 : index
    %c18 = arith.constant 18 : index
    %9 = vector.load %arg2[%c0_13, %c0_14, %c0_15, %c18] : memref<1x1x4x324xf32, #tpu.memory_space<vmem>>, vector<1x1x4x306xf32>
    %10 = vector.shape_cast %9 : vector<1x1x4x306xf32> to vector<4x306xf32>
    %c12 = arith.constant 12 : index
    %c0_16 = arith.constant 0 : index
    %11 = vector.load %arg8[%c12, %c0_16] : memref<108x324xf32, #tpu.memory_space<vmem>>, vector<4x306xf32>
    tpu.vector_store %arg8[%c12, %c0_16], %10 {strides = array<i32>} : memref<108x324xf32, #tpu.memory_space<vmem>>, vector<4x306xf32>,
    %c0_17 = arith.constant 0 : index
    %c0_18 = arith.constant 0 : index
    %c0_19 = arith.constant 0 : index
    %c19 = arith.constant 19 : index
    %12 = vector.load %arg2[%c0_17, %c0_18, %c0_19, %c19] : memref<1x1x4x324xf32, #tpu.memory_space<vmem>>, vector<1x1x4x305xf32>
    %13 = vector.shape_cast %12 : vector<1x1x4x305xf32> to vector<4x305xf32>
    %c16 = arith.constant 16 : index
    %c0_20 = arith.constant 0 : index
    %14 = vector.load %arg8[%c16, %c0_20] : memref<108x324xf32, #tpu.memory_space<vmem>>, vector<4x305xf32>
    tpu.vector_store %arg8[%c16, %c0_20], %13 {strides = array<i32>} : memref<108x324xf32, #tpu.memory_space<vmem>>, vector<4x305xf32>,
    %c0_21 = arith.constant 0 : index
    %c0_22 = arith.constant 0 : index
    %c0_23 = arith.constant 0 : index
    %c20 = arith.constant 20 : index
    %15 = vector.load %arg2[%c0_21, %c0_22, %c0_23, %c20] : memref<1x1x4x324xf32, #tpu.memory_space<vmem>>, vector<1x1x4x304xf32>
    %16 = vector.shape_cast %15 : vector<1x1x4x304xf32> to vector<4x304xf32>
    %c20_24 = arith.constant 20 : index
    %c0_25 = arith.constant 0 : index
    %17 = vector.load %arg8[%c20_24, %c0_25] : memref<108x324xf32, #tpu.memory_space<vmem>>, vector<4x304xf32>
    tpu.vector_store %arg8[%c20_24, %c0_25], %16 {strides = array<i32>} : memref<108x324xf32, #tpu.memory_space<vmem>>, vector<4x304xf32>,
    %c0_26 = arith.constant 0 : index
    %c0_27 = arith.constant 0 : index
    %c0_28 = arith.constant 0 : index
    %c36 = arith.constant 36 : index
    %18 = vector.load %arg2[%c0_26, %c0_27, %c0_28, %c36] : memref<1x1x4x324xf32, #tpu.memory_space<vmem>>, vector<1x1x4x288xf32>
    %19 = vector.shape_cast %18 : vector<1x1x4x288xf32> to vector<4x288xf32>
    %c24 = arith.constant 24 : index
    %c0_29 = arith.constant 0 : index
    %20 = vector.load %arg8[%c24, %c0_29] : memref<108x324xf32, #tpu.memory_space<vmem>>, vector<4x288xf32>
    tpu.vector_store %arg8[%c24, %c0_29], %19 {strides = array<i32>} : memref<108x324xf32, #tpu.memory_space<vmem>>, vector<4x288xf32>,
    %c0_30 = arith.constant 0 : index
    %c0_31 = arith.constant 0 : index
    %c0_32 = arith.constant 0 : index
    %c37 = arith.constant 37 : index
    %21 = vector.load %arg2[%c0_30, %c0_31, %c0_32, %c37] : memref<1x1x4x324xf32, #tpu.memory_space<vmem>>, vector<1x1x4x287xf32>
    %22 = vector.shape_cast %21 : vector<1x1x4x287xf32> to vector<4x287xf32>
    %c28 = arith.constant 28 : index
    %c0_33 = arith.constant 0 : index
    %23 = vector.load %arg8[%c28, %c0_33] : memref<108x324xf32, #tpu.memory_space<vmem>>, vector<4x287xf32>
    tpu.vector_store %arg8[%c28, %c0_33], %22 {strides = array<i32>} : memref<108x324xf32, #tpu.memory_space<vmem>>, vector<4x287xf32>,
    %c0_34 = arith.constant 0 : index
    %c0_35 = arith.constant 0 : index
    %c0_36 = arith.constant 0 : index
    %c38 = arith.constant 38 : index
    %24 = vector.load %arg2[%c0_34, %c0_35, %c0_36, %c38] : memref<1x1x4x324xf32, #tpu.memory_space<vmem>>, vector<1x1x4x286xf32>
    %25 = vector.shape_cast %24 : vector<1x1x4x286xf32> to vector<4x286xf32>
    %c32 = arith.constant 32 : index
    %c0_37 = arith.constant 0 : index
    %26 = vector.load %arg8[%c32, %c0_37] : memref<108x324xf32, #tpu.memory_space<vmem>>, vector<4x286xf32>
    tpu.vector_store %arg8[%c32, %c0_37], %25 {strides = array<i32>} : memref<108x324xf32, #tpu.memory_space<vmem>>, vector<4x286xf32>,
    %c0_38 = arith.constant 0 : index
    %c0_39 = arith.constant 0 : index
    %c0_40 = arith.constant 0 : index
    %c0_41 = arith.constant 0 : index
    %27 = vector.load %arg3[%c0_38, %c0_39, %c0_40, %c0_41] : memref<1x1x4x324xf32, #tpu.memory_space<vmem>>, vector<1x1x4x324xf32>
    %28 = vector.shape_cast %27 : vector<1x1x4x324xf32> to vector<4x324xf32>
    %c36_42 = arith.constant 36 : index
    %c0_43 = arith.constant 0 : index
    %29 = vector.load %arg8[%c36_42, %c0_43] : memref<108x324xf32, #tpu.memory_space<vmem>>, vector<4x324xf32>
    tpu.vector_store %arg8[%c36_42, %c0_43], %28 {strides = array<i32>} : memref<108x324xf32, #tpu.memory_space<vmem>>, vector<4x324xf32>,
    %c0_44 = arith.constant 0 : index
    %c0_45 = arith.constant 0 : index
    %c0_46 = arith.constant 0 : index
    %c1_47 = arith.constant 1 : index
    %30 = vector.load %arg3[%c0_44, %c0_45, %c0_46, %c1_47] : memref<1x1x4x324xf32, #tpu.memory_space<vmem>>, vector<1x1x4x323xf32>
    %31 = vector.shape_cast %30 : vector<1x1x4x323xf32> to vector<4x323xf32>
    %c40 = arith.constant 40 : index
    %c0_48 = arith.constant 0 : index
    %32 = vector.load %arg8[%c40, %c0_48] : memref<108x324xf32, #tpu.memory_space<vmem>>, vector<4x323xf32>
    tpu.vector_store %arg8[%c40, %c0_48], %31 {strides = array<i32>} : memref<108x324xf32, #tpu.memory_space<vmem>>, vector<4x323xf32>,
    %c0_49 = arith.constant 0 : index
    %c0_50 = arith.constant 0 : index
    %c0_51 = arith.constant 0 : index
    %c2_52 = arith.constant 2 : index
    %33 = vector.load %arg3[%c0_49, %c0_50, %c0_51, %c2_52] : memref<1x1x4x324xf32, #tpu.memory_space<vmem>>, vector<1x1x4x322xf32>
    %34 = vector.shape_cast %33 : vector<1x1x4x322xf32> to vector<4x322xf32>
    %c44 = arith.constant 44 : index
    %c0_53 = arith.constant 0 : index
    %35 = vector.load %arg8[%c44, %c0_53] : memref<108x324xf32, #tpu.memory_space<vmem>>, vector<4x322xf32>
    tpu.vector_store %arg8[%c44, %c0_53], %34 {strides = array<i32>} : memref<108x324xf32, #tpu.memory_space<vmem>>, vector<4x322xf32>,
    %c0_54 = arith.constant 0 : index
    %c0_55 = arith.constant 0 : index
    %c0_56 = arith.constant 0 : index
    %c18_57 = arith.constant 18 : index
    %36 = vector.load %arg3[%c0_54, %c0_55, %c0_56, %c18_57] : memref<1x1x4x324xf32, #tpu.memory_space<vmem>>, vector<1x1x4x306xf32>
    %37 = vector.shape_cast %36 : vector<1x1x4x306xf32> to vector<4x306xf32>
    %c48 = arith.constant 48 : index
    %c0_58 = arith.constant 0 : index
    %38 = vector.load %arg8[%c48, %c0_58] : memref<108x324xf32, #tpu.memory_space<vmem>>, vector<4x306xf32>
    tpu.vector_store %arg8[%c48, %c0_58], %37 {strides = array<i32>} : memref<108x324xf32, #tpu.memory_space<vmem>>, vector<4x306xf32>,
    %c0_59 = arith.constant 0 : index
    %c0_60 = arith.constant 0 : index
    %c0_61 = arith.constant 0 : index
    %c19_62 = arith.constant 19 : index
    %39 = vector.load %arg3[%c0_59, %c0_60, %c0_61, %c19_62] : memref<1x1x4x324xf32, #tpu.memory_space<vmem>>, vector<1x1x4x305xf32>
    %40 = vector.shape_cast %39 : vector<1x1x4x305xf32> to vector<4x305xf32>
    %c52 = arith.constant 52 : index
    %c0_63 = arith.constant 0 : index
    %41 = vector.load %arg8[%c52, %c0_63] : memref<108x324xf32, #tpu.memory_space<vmem>>, vector<4x305xf32>
    tpu.vector_store %arg8[%c52, %c0_63], %40 {strides = array<i32>} : memref<108x324xf32, #tpu.memory_space<vmem>>, vector<4x305xf32>,
    %c0_64 = arith.constant 0 : index
    %c0_65 = arith.constant 0 : index
    %c0_66 = arith.constant 0 : index
    %c20_67 = arith.constant 20 : index
    %42 = vector.load %arg3[%c0_64, %c0_65, %c0_66, %c20_67] : memref<1x1x4x324xf32, #tpu.memory_space<vmem>>, vector<1x1x4x304xf32>
    %43 = vector.shape_cast %42 : vector<1x1x4x304xf32> to vector<4x304xf32>
    %c56 = arith.constant 56 : index
    %c0_68 = arith.constant 0 : index
    %44 = vector.load %arg8[%c56, %c0_68] : memref<108x324xf32, #tpu.memory_space<vmem>>, vector<4x304xf32>
    tpu.vector_store %arg8[%c56, %c0_68], %43 {strides = array<i32>} : memref<108x324xf32, #tpu.memory_space<vmem>>, vector<4x304xf32>,
    %c0_69 = arith.constant 0 : index
    %c0_70 = arith.constant 0 : index
    %c0_71 = arith.constant 0 : index
    %c36_72 = arith.constant 36 : index
    %45 = vector.load %arg3[%c0_69, %c0_70, %c0_71, %c36_72] : memref<1x1x4x324xf32, #tpu.memory_space<vmem>>, vector<1x1x4x288xf32>
    %46 = vector.shape_cast %45 : vector<1x1x4x288xf32> to vector<4x288xf32>
    %c60 = arith.constant 60 : index
    %c0_73 = arith.constant 0 : index
    %47 = vector.load %arg8[%c60, %c0_73] : memref<108x324xf32, #tpu.memory_space<vmem>>, vector<4x288xf32>
    tpu.vector_store %arg8[%c60, %c0_73], %46 {strides = array<i32>} : memref<108x324xf32, #tpu.memory_space<vmem>>, vector<4x288xf32>,
    %c0_74 = arith.constant 0 : index
    %c0_75 = arith.constant 0 : index
    %c0_76 = arith.constant 0 : index
    %c37_77 = arith.constant 37 : index
    %48 = vector.load %arg3[%c0_74, %c0_75, %c0_76, %c37_77] : memref<1x1x4x324xf32, #tpu.memory_space<vmem>>, vector<1x1x4x287xf32>
    %49 = vector.shape_cast %48 : vector<1x1x4x287xf32> to vector<4x287xf32>
    %c64 = arith.constant 64 : index
    %c0_78 = arith.constant 0 : index
    %50 = vector.load %arg8[%c64, %c0_78] : memref<108x324xf32, #tpu.memory_space<vmem>>, vector<4x287xf32>
    tpu.vector_store %arg8[%c64, %c0_78], %49 {strides = array<i32>} : memref<108x324xf32, #tpu.memory_space<vmem>>, vector<4x287xf32>,
    %c0_79 = arith.constant 0 : index
    %c0_80 = arith.constant 0 : index
    %c0_81 = arith.constant 0 : index
    %c38_82 = arith.constant 38 : index
    %51 = vector.load %arg3[%c0_79, %c0_80, %c0_81, %c38_82] : memref<1x1x4x324xf32, #tpu.memory_space<vmem>>, vector<1x1x4x286xf32>
    %52 = vector.shape_cast %51 : vector<1x1x4x286xf32> to vector<4x286xf32>
    %c68 = arith.constant 68 : index
    %c0_83 = arith.constant 0 : index
    %53 = vector.load %arg8[%c68, %c0_83] : memref<108x324xf32, #tpu.memory_space<vmem>>, vector<4x286xf32>
    tpu.vector_store %arg8[%c68, %c0_83], %52 {strides = array<i32>} : memref<108x324xf32, #tpu.memory_space<vmem>>, vector<4x286xf32>,
    %c0_84 = arith.constant 0 : index
    %c0_85 = arith.constant 0 : index
    %c0_86 = arith.constant 0 : index
    %c0_87 = arith.constant 0 : index
    %54 = vector.load %arg4[%c0_84, %c0_85, %c0_86, %c0_87] : memref<1x1x4x324xf32, #tpu.memory_space<vmem>>, vector<1x1x4x324xf32>
    %55 = vector.shape_cast %54 : vector<1x1x4x324xf32> to vector<4x324xf32>
    %c72 = arith.constant 72 : index
    %c0_88 = arith.constant 0 : index
    %56 = vector.load %arg8[%c72, %c0_88] : memref<108x324xf32, #tpu.memory_space<vmem>>, vector<4x324xf32>
    tpu.vector_store %arg8[%c72, %c0_88], %55 {strides = array<i32>} : memref<108x324xf32, #tpu.memory_space<vmem>>, vector<4x324xf32>,
    %c0_89 = arith.constant 0 : index
    %c0_90 = arith.constant 0 : index
    %c0_91 = arith.constant 0 : index
    %c1_92 = arith.constant 1 : index
    %57 = vector.load %arg4[%c0_89, %c0_90, %c0_91, %c1_92] : memref<1x1x4x324xf32, #tpu.memory_space<vmem>>, vector<1x1x4x323xf32>
    %58 = vector.shape_cast %57 : vector<1x1x4x323xf32> to vector<4x323xf32>
    %c76 = arith.constant 76 : index
    %c0_93 = arith.constant 0 : index
    %59 = vector.load %arg8[%c76, %c0_93] : memref<108x324xf32, #tpu.memory_space<vmem>>, vector<4x323xf32>
    tpu.vector_store %arg8[%c76, %c0_93], %58 {strides = array<i32>} : memref<108x324xf32, #tpu.memory_space<vmem>>, vector<4x323xf32>,
    %c0_94 = arith.constant 0 : index
    %c0_95 = arith.constant 0 : index
    %c0_96 = arith.constant 0 : index
    %c2_97 = arith.constant 2 : index
    %60 = vector.load %arg4[%c0_94, %c0_95, %c0_96, %c2_97] : memref<1x1x4x324xf32, #tpu.memory_space<vmem>>, vector<1x1x4x322xf32>
    %61 = vector.shape_cast %60 : vector<1x1x4x322xf32> to vector<4x322xf32>
    %c80 = arith.constant 80 : index
    %c0_98 = arith.constant 0 : index
    %62 = vector.load %arg8[%c80, %c0_98] : memref<108x324xf32, #tpu.memory_space<vmem>>, vector<4x322xf32>
    tpu.vector_store %arg8[%c80, %c0_98], %61 {strides = array<i32>} : memref<108x324xf32, #tpu.memory_space<vmem>>, vector<4x322xf32>,
    %c0_99 = arith.constant 0 : index
    %c0_100 = arith.constant 0 : index
    %c0_101 = arith.constant 0 : index
    %c18_102 = arith.constant 18 : index
    %63 = vector.load %arg4[%c0_99, %c0_100, %c0_101, %c18_102] : memref<1x1x4x324xf32, #tpu.memory_space<vmem>>, vector<1x1x4x306xf32>
    %64 = vector.shape_cast %63 : vector<1x1x4x306xf32> to vector<4x306xf32>
    %c84 = arith.constant 84 : index
    %c0_103 = arith.constant 0 : index
    %65 = vector.load %arg8[%c84, %c0_103] : memref<108x324xf32, #tpu.memory_space<vmem>>, vector<4x306xf32>
    tpu.vector_store %arg8[%c84, %c0_103], %64 {strides = array<i32>} : memref<108x324xf32, #tpu.memory_space<vmem>>, vector<4x306xf32>,
    %c0_104 = arith.constant 0 : index
    %c0_105 = arith.constant 0 : index
    %c0_106 = arith.constant 0 : index
    %c19_107 = arith.constant 19 : index
    %66 = vector.load %arg4[%c0_104, %c0_105, %c0_106, %c19_107] : memref<1x1x4x324xf32, #tpu.memory_space<vmem>>, vector<1x1x4x305xf32>
    %67 = vector.shape_cast %66 : vector<1x1x4x305xf32> to vector<4x305xf32>
    %c88 = arith.constant 88 : index
    %c0_108 = arith.constant 0 : index
    %68 = vector.load %arg8[%c88, %c0_108] : memref<108x324xf32, #tpu.memory_space<vmem>>, vector<4x305xf32>
    tpu.vector_store %arg8[%c88, %c0_108], %67 {strides = array<i32>} : memref<108x324xf32, #tpu.memory_space<vmem>>, vector<4x305xf32>,
    %c0_109 = arith.constant 0 : index
    %c0_110 = arith.constant 0 : index
    %c0_111 = arith.constant 0 : index
    %c20_112 = arith.constant 20 : index
    %69 = vector.load %arg4[%c0_109, %c0_110, %c0_111, %c20_112] : memref<1x1x4x324xf32, #tpu.memory_space<vmem>>, vector<1x1x4x304xf32>
    %70 = vector.shape_cast %69 : vector<1x1x4x304xf32> to vector<4x304xf32>
    %c92 = arith.constant 92 : index
    %c0_113 = arith.constant 0 : index
    %71 = vector.load %arg8[%c92, %c0_113] : memref<108x324xf32, #tpu.memory_space<vmem>>, vector<4x304xf32>
    tpu.vector_store %arg8[%c92, %c0_113], %70 {strides = array<i32>} : memref<108x324xf32, #tpu.memory_space<vmem>>, vector<4x304xf32>,
    %c0_114 = arith.constant 0 : index
    %c0_115 = arith.constant 0 : index
    %c0_116 = arith.constant 0 : index
    %c36_117 = arith.constant 36 : index
    %72 = vector.load %arg4[%c0_114, %c0_115, %c0_116, %c36_117] : memref<1x1x4x324xf32, #tpu.memory_space<vmem>>, vector<1x1x4x288xf32>
    %73 = vector.shape_cast %72 : vector<1x1x4x288xf32> to vector<4x288xf32>
    %c96 = arith.constant 96 : index
    %c0_118 = arith.constant 0 : index
    %74 = vector.load %arg8[%c96, %c0_118] : memref<108x324xf32, #tpu.memory_space<vmem>>, vector<4x288xf32>
    tpu.vector_store %arg8[%c96, %c0_118], %73 {strides = array<i32>} : memref<108x324xf32, #tpu.memory_space<vmem>>, vector<4x288xf32>,
    %c0_119 = arith.constant 0 : index
    %c0_120 = arith.constant 0 : index
    %c0_121 = arith.constant 0 : index
    %c37_122 = arith.constant 37 : index
    %75 = vector.load %arg4[%c0_119, %c0_120, %c0_121, %c37_122] : memref<1x1x4x324xf32, #tpu.memory_space<vmem>>, vector<1x1x4x287xf32>
    %76 = vector.shape_cast %75 : vector<1x1x4x287xf32> to vector<4x287xf32>
    %c100 = arith.constant 100 : index
    %c0_123 = arith.constant 0 : index
    %77 = vector.load %arg8[%c100, %c0_123] : memref<108x324xf32, #tpu.memory_space<vmem>>, vector<4x287xf32>
    tpu.vector_store %arg8[%c100, %c0_123], %76 {strides = array<i32>} : memref<108x324xf32, #tpu.memory_space<vmem>>, vector<4x287xf32>,
    %c0_124 = arith.constant 0 : index
    %c0_125 = arith.constant 0 : index
    %c0_126 = arith.constant 0 : index
    %c38_127 = arith.constant 38 : index
    %78 = vector.load %arg4[%c0_124, %c0_125, %c0_126, %c38_127] : memref<1x1x4x324xf32, #tpu.memory_space<vmem>>, vector<1x1x4x286xf32>
    %79 = vector.shape_cast %78 : vector<1x1x4x286xf32> to vector<4x286xf32>
    %c104 = arith.constant 104 : index
    %c0_128 = arith.constant 0 : index
    %80 = vector.load %arg8[%c104, %c0_128] : memref<108x324xf32, #tpu.memory_space<vmem>>, vector<4x286xf32>
    tpu.vector_store %arg8[%c104, %c0_128], %79 {strides = array<i32>} : memref<108x324xf32, #tpu.memory_space<vmem>>, vector<4x286xf32>,
    %c0_129 = arith.constant 0 : index
    %c0_130 = arith.constant 0 : index
    %81 = vector.load %arg5[%c0_129, %c0_130] : memref<8x108xf32, #tpu.memory_space<vmem>>, vector<8x108xf32>
    %c0_131 = arith.constant 0 : index
    %c0_132 = arith.constant 0 : index
    %82 = vector.load %arg8[%c0_131, %c0_132] : memref<108x324xf32, #tpu.memory_space<vmem>>, vector<108x324xf32>
    %cst = arith.constant dense<0.000000e+00> : vector<8x324xf32>
    %83 = tpu.matmul %81, %82, %cst {dimension_numbers = #tpu.dot_dimension_numbers<[1], [0], [0], [1], [0, 0, 1, 1], [], []>} : vector<8x108xf32>, vector<108x324xf32>, vector<8x324xf32> -> vector<8x324xf32>
    %c0_133 = arith.constant 0 : index
    %c0_134 = arith.constant 0 : index
    %84 = vector.load %arg6[%c0_133, %c0_134] : memref<8x1xf32, #tpu.memory_space<vmem>>, vector<8x1xf32>
    %85 = vector.broadcast %84 : vector<8x1xf32> to vector<8x324xf32>
    %86 = arith.addf %83, %85 : vector<8x324xf32>
    %cst_135 = arith.constant 0.000000e+00 : f32
    %87 = vector.broadcast %cst_135 : f32 to vector<8x324xf32>
    %88 = arith.cmpf oge, %86, %87 : vector<8x324xf32>
    %cst_136 = arith.constant 1.000000e-01 : f32
    %89 = vector.broadcast %cst_136 : f32 to vector<8x324xf32>
    %90 = arith.mulf %89, %86 : vector<8x324xf32>
    %91 = arith.select %88, %86, %90 : vector<8x324xi1>, vector<8x324xf32>
    %c0_137 = arith.constant 0 : index
    %c0_138 = arith.constant 0 : index
    %c0_139 = arith.constant 0 : index
    %c0_140 = arith.constant 0 : index
    %92 = vector.load %arg7[%c0_137, %c0_138, %c0_139, %c0_140] : memref<1x1x8x324xf32, #tpu.memory_space<vmem>>, vector<1x1x8x324xf32>
    %93 = vector.shape_cast %92 : vector<1x1x8x324xf32> to vector<8x324xf32>
    %94 = vector.shape_cast %91 : vector<8x324xf32> to vector<1x1x8x324xf32>
    tpu.vector_store %arg7[%c0_137, %c0_138, %c0_139, %c0_140], %94 {strides = array<i32>} : memref<1x1x8x324xf32, #tpu.memory_space<vmem>>, vector<1x1x8x324xf32>,
    return
  }
  func.func @transform_0(%arg0: i32, %arg1: i32) -> (i32, i32, i32, i32) {
    %c0_i32 = arith.constant 0 : i32
    %c0_i32_0 = arith.constant 0 : i32
    %c0_i32_1 = arith.constant 0 : i32
    return %arg0, %arg1, %c0_i32, %c0_i32_0 : i32, i32, i32, i32
  }
  func.func @transform_1(%arg0: i32, %arg1: i32) -> (i32, i32, i32, i32) {
    %c1_i32 = arith.constant 1 : i32
    %0 = arith.addi %arg1, %c1_i32 : i32
    %c0_i32 = arith.constant 0 : i32
    %c0_i32_0 = arith.constant 0 : i32
    %c0_i32_1 = arith.constant 0 : i32
    return %arg0, %0, %c0_i32, %c0_i32_0 : i32, i32, i32, i32
  }
  func.func @transform_2(%arg0: i32, %arg1: i32) -> (i32, i32, i32, i32) {
    %c2_i32 = arith.constant 2 : i32
    %0 = arith.addi %arg1, %c2_i32 : i32
    %c0_i32 = arith.constant 0 : i32
    %c0_i32_0 = arith.constant 0 : i32
    %c0_i32_1 = arith.constant 0 : i32
    return %arg0, %0, %c0_i32, %c0_i32_0 : i32, i32, i32, i32
  }
  func.func @transform_3(%arg0: i32, %arg1: i32) -> (i32, i32) {
    %c0_i32 = arith.constant 0 : i32
    %c0_i32_0 = arith.constant 0 : i32
    %c0_i32_1 = arith.constant 0 : i32
    return %c0_i32, %c0_i32_0 : i32, i32
  }
  func.func @transform_4(%arg0: i32, %arg1: i32) -> (i32, i32) {
    %c0_i32 = arith.constant 0 : i32
    %c0_i32_0 = arith.constant 0 : i32
    %c0_i32_1 = arith.constant 0 : i32
    return %c0_i32, %c0_i32_0 : i32, i32
  }
  func.func @transform_5(%arg0: i32, %arg1: i32) -> (i32, i32, i32, i32) {
    %c0_i32 = arith.constant 0 : i32
    %c0_i32_0 = arith.constant 0 : i32
    %c0_i32_1 = arith.constant 0 : i32
    return %arg0, %arg1, %c0_i32, %c0_i32_0 : i32, i32, i32, i32
  }
}

</mosaic_0001>

<bundles_post_ra>
// kernel: tpu_custom_call.1
= control target key start
LH: loop header
LB: loop body
LE: loop exit
PB: predicated region body
PF: predicated region fallthrough
CT: control target
= control target key end

     0   :  { %s2354_s0 = inlined_call_operand.hbm [shape: f32[2,10,4,324], index: 0, kind: input, shape index: {}]   ;;  %s2355_s1 = inlined_call_operand.hbm [shape: f32[2,10,4,324], index: 1, kind: input, shape index: {}]   ;;  %s2356_s2 = inlined_call_operand.hbm [shape: f32[2,10,4,324], index: 2, kind: input, shape index: {}]   ;;  %s2357_s3 = inlined_call_operand.vmem [shape: f32[8,108], index: 3, kind: input, shape index: {}]   ;;  %s2358_s4 = inlined_call_operand.vmem [shape: f32[8,1], index: 4, kind: input, shape index: {}]   ;;  %s2359_s5 = inlined_call_operand.hbm [shape: f32[2,8,8,324], index: 5, kind: output, shape index: {}]  }
   0x1   :  { %2369 = sst [smem:[#allocation22_spill]] %s2354_s0 }
   0x2   :  { %2370 = sst [smem:[#allocation23_spill]] %s2355_s1 }
   0x3   :  { %2371 = sst [smem:[#allocation24_spill]] %s2357_s3 }
   0x4   :  { %2372 = sst [smem:[#allocation25_spill]] %s2358_s4 }
   0x5   :  { %2373 = sst [smem:[#allocation26_spill]] %s2359_s5 }
   0x6   :  { %10 = vsyncpa [#allocation4], 0 }
   0x7   :  { %12 = vsyncpa [#allocation4 + $0x1], 0 }
   0x8   :  { %13 = vsyncpa [#allocation7], 0 }
   0x9   :  { %15 = vsyncpa [#allocation7 + $0x1], 0 }
   0xa   :  { %16 = vsyncpa [#allocation5], 0 }
   0xb   :  { %18 = vsyncpa [#allocation5 + $0x1], 0  ;;  %s1768_s18 = smov 0   ;;  %s1770_s19 = smov 0  }
   0xc   :  { %s1772_s20 = smov 0   ;;  %s1774_s21 = smov 0  }
   0xd   :  { %s1776_s22 = smov 0   ;;  %s1778_s23 = smov 0  }
   0xe   :  { %s1780_s24 = smov 0   ;;  %s1782_s25 = smov 0  }
   0xf   :  { %s1784_s26 = smov 0   ;;  %s1786_s27 = smov 0  }
  0x10   :  { %s1788_s28 = smov 0   ;;  %s1790_s29 = smov 0  }
  0x11   :  { %s1792_s30 = smov 0   ;;  %s1794_s6 = smov 0  }
  0x12 LB: > { %2374 = sst [smem:[#allocation14_spill]] %s1691_s22  ;;  %s1839_s7 = sadd.s32 4294967295, %s1727_s6   ;;  %s1727_s6 = sphi %s1794_s6, %s24_s6   ;;  %s1723_s30 = sphi %s1792_s30, %s2406_s30   ;;  %s1719_s29 = sphi %s1790_s29, %s2405_s29   ;;  %s1715_s28 = sphi %s1788_s28, %s2415_s28   ;;  %s1711_s27 = sphi %s1786_s27, %s2403_s27   ;;  %s1707_s26 = sphi %s1784_s26, %s2414_s26   ;;  %s1703_s25 = sphi %s1782_s25, %s2413_s25   ;;  %s1699_s24 = sphi %s1780_s24, %s2412_s24   ;;  %s1695_s23 = sphi %s1778_s23, %s2411_s23   ;;  %s1691_s22 = sphi %s1776_s22, %s2410_s22   ;;  %s1687_s21 = sphi %s1774_s21, %s2402_s21   ;;  %s1683_s20 = sphi %s1772_s20, %s2409_s20   ;;  %s1679_s19 = sphi %s1770_s19, %s2408_s19   ;;  %s1675_s18 = sphi %s1768_s18, %s2407_s18  }
  0x13   : > { %2375 = sst [smem:[#allocation15_spill]] %s1711_s27  ;;  %s33_s8 = sadd.s32 1, %s1719_s29 }
  0x14   : > { %2376 = sst [smem:[#allocation16_spill]] %s1715_s28  ;;  %p34_p0 = scmp.ge.s32.totalorder %s33_s8, 8 }
  0x15   : > { %2377 = sst [smem:[#allocation17_spill]] %s1719_s29  ;;  %s36_s9 = sadd.s32 1, %s1723_s30 }
  0x16   : > { %2378 = sst [smem:[#allocation18_spill]] %s1723_s30  ;;  %p53_p1 = scmp.eq.s32.totalorder %s1727_s6, 0 }
  0x17   : > { %p59_p2 = scmp.eq.s32.totalorder %s1839_s7, 0  ;;  %s2417_s9 = smov (!%p34_p0, %s36_s9), %s1723_s30 }
  0x18   : > { %s1845_s10 = scalar_select %p34_p0, 0, %s33_s8  }
  0x19   : > { %p38_p3 = scmp.ge.s32.totalorder %s2417_s9, 2  ;;  %s75_s14 = sadd.s32 1, %s1695_s23 }
  0x1a   : > { %2379 = sst [smem:[#allocation19_spill]] %s1845_s10  ;;  %s69_s12 = sadd.s32 1, %s1845_s10 }
  0x1b   : > { %s71_s13 = ssub.s32 %s33_s8, %s69_s12  ;;  %p82_p4 = scmp.ne.s32.totalorder %s1695_s23, %s1691_s22 }
  0x1c   : > { %s2419_s9 = smov (%p38_p3, %s2417_s9), 0  ;;  %p88_p6 = scmp.ne.s32.totalorder %s1691_s22, %s1687_s21 }
  0x1d   : > { %2380 = sst [smem:[#allocation20_spill]] %s2419_s9  ;;  %p1858_p5 = por %p82_p4, %p53_p1 }
  0x1e   : > { %s1866_s16 = ssub.s32 %s1723_s30, %s2419_s9  ;;  %s98_s17 = sadd.s32 2, %s1719_s29 }
  0x1f   : > { %s72_s8 = sor.u32 %s71_s13, %s1866_s16  ;;  %p1872_p7 = por %p88_p6, %p59_p2 }
  0x20   : > { %p73_p8 = scmp.eq.s32.totalorder %s72_s8, 0  ;;  %s99_s11 = sadd.s32 2, %s1845_s10 }
  0x21   : > { %s2382_s12 = scalar_select %p1872_p7, 1, 0 }
  0x22   : > { %s101_s5 = ssub.s32 %s98_s17, %s99_s11  ;;  %p1359_p9 = scmp.lt.s32.totalorder %s1727_s6, 16 }
  0x23   : > { %2383 = sst [smem:[#allocation21_spill]] %s2382_s12  ;;  %s102_s27 = sor.u32 %s101_s5, %s1866_s16 }
  0x24   : > { %s1878_s28 = scalar_select %p73_p8, %s1695_s23, %s75_s14  }
  0x25   : > { %p1882_p10 = scmp.eq.s32.totalorder %s102_s27, 0  ;;  %s1327_s9 = smul.u32 3, %s1719_s29 }
  0x26   : > { %s1328_s13 = smul.u32 30, %s1723_s30  ;;  %s240_s3 = sand.u32 1, %s1727_s6  }
  0x27   : > { %s242_s4 = sand.u32 1, %s1695_s23   ;;  %p1349_p11 = pnand %p1359_p9, %p1858_p5 }
  0x28   : > { %s227_s22 = sadd.s32 %s1328_s13, %s1327_s9  ;;  %s1329_s12 = smul.u32 12, %s242_s4 }
  0x29   : > { %s1890_s11 = sshll.u32 %s227_s22, 2  ;;  %s2385_s1 = sld [smem:[#allocation23_spill]] }
  0x2a   : > { %s244_s4 = scalar_lea.vmem [#allocation6], %s1329_s12  ;;  %s1900_s15 = scalar_lea.sflag [#allocation7], %s240_s3 }
  0x2b   : > { %s256_s9 = sshll.u32 %s244_s4, 4  ;;  %p1316_p12 = scmp.ge.s32.totalorder %s1727_s6, 1  ;;  %s257_s9 = int_to_ptr.vmem [resolvable:$true] %s256_s9 }
  0x2c   : > { %p284_p13 = scmp.lt.s32.totalorder %s1727_s6, 17  ;;  %s1310_s12 = sadd.s32 4294967294, %s1727_s6  }
  0x2d   : > { %s2387_s13 = ssub.s32 %s1719_s29, %s1845_s10  ;;  %s45_s27 = sadd.s32 1, %s1707_s26 }
  0x2e   : > { %p1905_p0 = pnand %p1316_p12, %p284_p13  ;;  %s42_s5 = sor.u32 %s2387_s13, %s1866_s16 }
  0x2f   : > { %s1213_s14 = scalar_lea.hbm %s2385_s1, %s1890_s11  ;;  %p43_p3 = scmp.eq.s32.totalorder %s42_s5, 0 }
  0x30   : > { %s1214_s17 = scalar_lea.hbm %s1213_s14, 12  ;;  %p52_p4 = scmp.ne.s32.totalorder %s1707_s26, %s1703_s25 }
  0x31   : > { %s254_s22 = sshll.u32 %s1214_s17, 4  ;;  %p58_p5 = scmp.ne.s32.totalorder %s1703_s25, %s1699_s24  ;;  %s255_s22 = int_to_ptr.hbm [resolvable:$true] %s254_s22 }
  0x32   : > { %1351 = dma.hbm_to_vmem [thread:$0]  (!%p1349_p11), %s255_s22, 192, %s257_s9, %s1900_s15  }
  0x33   : > { %p186_p6 = scmp.eq.s32.totalorder %s1839_s7, 15  ;;  %p54_p8 = por %p53_p1, %p52_p4 }
  0x34   : > { %s1921_s3 = scalar_select %p43_p3, %s1707_s26, %s45_s27  }
  0x35   : > { %p1927_p11 = por %p59_p2, %p58_p5  ;;  %p1931_p12 = por %p186_p6, %p52_p4 }
  0x36   : > { %p192_p13 = scmp.eq.s32.totalorder %s1310_s12, 15  ;;  %s218_s17 = sand.u32 1, %s1707_s26  }
  0x37   : > { %s2390_s0 = sld [smem:[#allocation22_spill]]  ;;  %s1326_s5 = smul.u32 12, %s218_s17 }
  0x38   : > { %p1940_p3 = por %p192_p13, %p58_p5  ;;  %p1346_p4 = pnand %p1359_p9, %p54_p8 }
  0x39   : > { %s222_s12 = scalar_lea.vmem [#allocation3], %s1326_s5  ;;  %s219_s4 = scalar_lea.sflag [#allocation4], %s218_s17 }
  0x3a   : > { %s233_s1 = sshll.u32 %s222_s12, 4  ;;  %s105_s9 = sadd.s32 1, %s1683_s20  ;;  %s234_s1 = int_to_ptr.vmem [resolvable:$true] %s233_s1 }
  0x3b   : > { %p112_p6 = scmp.ne.s32.totalorder %s1683_s20, %s1679_s19  ;;  %p118_p13 = scmp.ne.s32.totalorder %s1679_s19, %s1675_s18 }
  0x3c   : > { %s265_s10 = sand.u32 1, %s1683_s20   ;;  %s1222_s29 = scalar_lea.hbm %s2356_s2, %s1890_s11 }
  0x3d   : > { %s229_s22 = scalar_lea.hbm %s2390_s0, %s1890_s11  ;;  %p114_p5 = por %p112_p6, %p53_p1 }
  0x3e   : > { %s231_s27 = sshll.u32 %s229_s22, 4  ;;  %p1965_p8 = por %p118_p13, %p59_p2  ;;  %s232_s27 = int_to_ptr.hbm [resolvable:$true] %s231_s27 }
  0x3f   : > { %1348 = dma.hbm_to_vmem [thread:$0]  (!%p1346_p4), %s232_s27, 192, %s234_s1, %s219_s4  }
  0x40   : > { %s1952_s0 = scalar_select %p1882_p10, %s1683_s20, %s105_s9  }
  0x41   : > { %s1330_s1 = smul.u32 12, %s265_s10  ;;  %s1223_s17 = scalar_lea.hbm %s1222_s29, 24 }
  0x42   : > { %p1352_p4 = pnand %p1359_p9, %p114_p5  ;;  %s277_s21 = sshll.u32 %s1223_s17, 4  ;;  %s278_s21 = int_to_ptr.hbm [resolvable:$true] %s277_s21 }
  0x43   : > { %s267_s27 = scalar_lea.vmem [#allocation8], %s1330_s1  ;;  %288 = sbr.rel (%p1905_p0) target bundleno = 604 (0x25c), region = 40 }
  0x44   : > { %s279_s12 = sshll.u32 %s267_s27, 4  ;;  %s1975_s18 = sand.u32 (!%p1905_p0), 1, %s1703_s25   ;;  %s280_s12 = int_to_ptr.vmem [resolvable:$true] %s279_s12 }
  0x45   : > { %1354 = dma.hbm_to_vmem [thread:$0]  (!%p1352_p4), %s278_s21, 192, %s280_s12, %s1900_s15  }
  0x46   : > { %s1331_s30 = smul.u32 (!%p1905_p0), 12, %s1975_s18  ;;  %s291_s10 = scalar_lea.sflag (!%p1905_p0), [#allocation4], %s1975_s18 }
  0x48   : > { %s1979_s29 = scalar_lea.vmem [#allocation3], %s1331_s30 }
  0x49   : > { %1658 = dma.done.wait (%p1927_p11), %s291_s10, 192  }
  0x4a   : > { %1660 = vsyncadd (%p1927_p11), %s291_s10, 4294967104  ;;  %s2393_s11 = sld [smem:[#allocation14_spill]]  ;;  %s300_s8 = sand.u32 1, %s1839_s7  }
  0x4b   : > { %s301_s22 = scalar_lea.sflag [#allocation7], %s300_s8 }
  0x50   : > { %s302_s4 = sand.u32 1, %s2393_s11  }
  0x51   : > { %s1332_s9 = smul.u32 12, %s302_s4 }
  0x53   : > { %s1987_s1 = scalar_lea.vmem [#allocation6], %s1332_s9 }
  0x54   : > { %1662 = dma.done.wait (%p1872_p7), %s301_s22, 192  }
  0x55   : > { %1664 = vsyncadd (%p1872_p7), %s301_s22, 4294967104  ;;  %s312_s17 = sand.u32 1, %s1679_s19  }
  0x56   : > { %s1333_s21 = smul.u32 12, %s312_s17 }
  0x58   : > { %s1994_s14 = scalar_lea.vmem [#allocation8], %s1333_s21 }
  0x59   : > { %1666 = dma.done.wait (%p1965_p8), %s301_s22, 192  }
  0x5a   : > { %1668 = vsyncadd (%p1965_p8), %s301_s22, 4294967104  ;;  %v355_v0 = vld [vmem:[%s1979_s29 + $0x8] sm:$0xf]  ;;  %v2002_v1 = vld [vmem:[%s1979_s29] sm:$0xff]  ;;  %s1729_s7 = smov 127   ;;  %s1730_s5 = smov 126  }
  0x5b   : > { %360 = vst [vmem:[#allocation1 + $0x10] ss:$2 sm:$0xff] %v355_v0  ;;  %v372_v2 = vld [vmem:[%s1979_s29 + $0x8] sm:$0xf]  ;;  %s1731_s27 = smov 110   ;;  %s1732_s12 = smov 109  }
  0x5c   : > { %358 = vst [vmem:[#allocation1] ss:$2 sm:$0xff] %v2002_v1  ;;  %v399_v6 = vld [vmem:[%s1979_s29 + $0x8] sm:$0xf]  ;;  %s1733_s30 = smov 108   ;;  %s1734_s10 = smov 92  }
  0x5d   : > { %v425_v10 = vld [vmem:[%s1979_s29 + $0x8] sm:$0xf]  ;;  %s1735_s11 = smov 91   ;;  %v584_v34 = vld [vmem:[%s1987_s1 + $0x8] sm:$0xf]  ;;  %v2056_v35 = vld [vmem:[%s1987_s1] sm:$0xff] }
  0x5e   : > { %v452_v14 = vld [vmem:[%s1979_s29 + $0x8] sm:$0xf]  ;;  %s1736_s15 = smov 90   ;;  %v602_v39 = vld [vmem:[%s1987_s1 + $0x8] sm:$0xf]  ;;  %vm396_vm0 = vcmask 547844  }
  0x5f   : > { %v478_v18 = vld [vmem:[%s1979_s29 + $0x8] sm:$0xf]  ;;  %v627_v43 = vld [vmem:[%s1987_s1 + $0x8] sm:$0xf]  ;;  %vm422_vm1 = vcmask 535552   ;;  %vm502_vm2 = vcmask 392196  }
  0x60   : > { %v505_v22 = vld [vmem:[%s1979_s29 + $0x8] sm:$0xf]  ;;  %v653_v47 = vld [vmem:[%s1987_s1 + $0x8] sm:$0xf]  ;;  %vm388_vm3 = vcmask 1039360   ;;  %vm449_vm4 = vcmask 408580  }
  0x61   : > { %v531_v26 = vld [vmem:[%s1979_s29 + $0x8] sm:$0xf]  ;;  %v678_v51 = vld [vmem:[%s1987_s1 + $0x8] sm:$0xf]  ;;  %vm369_vm5 = vcmask 551936   ;;  %vm2368_vm6 = vcmask 252932  }
  0x62   : > { %v2006_v3 = vld.sshfl [vmem:[#allocation1 + $0x10] sm:$0xff pattern:$0x75316420]  ;;  %v558_v30 = vld [vmem:[%s1979_s29 + $0x8] sm:$0xf]  ;;  %vm475_vm7 = vcmask 396288  }
  0x63   : > { %378 = vst [vmem:[#allocation1 + $0x11] ss:$2 sm:$0xff] %v372_v2  ;;  %v361_v4 = vld.sshfl [vmem:[#allocation1] sm:$0xff pattern:$0x75316420]  ;;  %vm581_vm8 = vcmask 240640  }
  0x64   : > { %v362_v5 = vld.sshfl [vmem:[#allocation1 + $0x8] sm:$0xff pattern:$0x75316420]  ;;  %367 = vst [vmem:[#allocation2] sm:$0xf] %v361_v4  ;;  %vm528_vm9 = vcmask 257024  }
  0x65   : > { %376 = vst [vmem:[#allocation1 + $0x1] ss:$2 sm:$0xff] %v2002_v1  ;;  %v704_v55 = vld [vmem:[%s1987_s1 + $0x8] sm:$0xf]  ;;  %vm599_vm10 = vcmask 556036   ;;  %vm624_vm11 = vcmask 543744  }
  0x66   : > { %368 = vst [vmem:[#allocation2 + $0x8] sm:$0xf] %v362_v5  ;;  %v729_v59 = vld [vmem:[%s1987_s1 + $0x8] sm:$0xf]  ;;  %vm573_vm12 = vcmask 736256   ;;  %vm675_vm13 = vcmask 404480  }
  0x67   : > { %v755_v63 = vld [vmem:[%s1987_s1 + $0x8] sm:$0xf]  ;;  %370 = vst.msk [vmem:[#allocation2 + $0x10] sm:$0xf] %vm369_vm5, %v2006_v3  ;;  %vm650_vm14 = vcmask 539652   ;;  %vm414_vm15 = vcmask 1031168  }
  0x68   : > { %s2396_s4 = sld [smem:[#allocation25_spill]]  ;;  %s1153_s9 = scalar_lea.sflag [#allocation5], %s1975_s18 }
  0x69   : > { %s2398_s17 = sld [smem:[#allocation15_spill]] }
  0x6a   : > { %v381_v7 = vld.sshfl [vmem:[#allocation1 + $0x10] sm:$0xff pattern:$0x75316420]  ;;  %s2399_s21 = sld [smem:[#allocation16_spill]] }
  0x6b   : > { %386 = vrot.lane.b32.xlu1 %v381_v7, %s1729_s7  ;;  %404 = vst [vmem:[#allocation1 + $0x10] ss:$2 sm:$0xff] %v399_v6  ;;  %v780_v7 = vld [vmem:[%s1987_s1 + $0x8] sm:$0xf]  ;;  %s2397_s1 = sld [smem:[#allocation24_spill]] }
  0x6c   : > { %v379_v8 = vld.sshfl [vmem:[#allocation1] sm:$0xff pattern:$0x75316420]  ;;  %v380_v9 = vld.sshfl [vmem:[#allocation1 + $0x8] sm:$0xff pattern:$0x75316420] }
  0x6d   : > { %382 = vrot.lane.b32.xlu0 %v379_v8, %s1729_s7  ;;  %402 = vst [vmem:[#allocation1] ss:$2 sm:$0xff] %v2002_v1 }
  0x72   : > { %v407_v11 = vld.sshfl [vmem:[#allocation1 + $0x10] sm:$0xff pattern:$0x75316420] }
  0x73   : > { %431 = vst [vmem:[#allocation1 + $0x11] ss:$2 sm:$0xff] %v425_v10  ;;  %412 = vrot.lane.b32.xlu2 %v407_v11, %s1730_s5 }
  0x74   : > { %v405_v12 = vld.sshfl [vmem:[#allocation1] sm:$0xff pattern:$0x75316420]  ;;  %v2015_v13 = vld.sshfl [vmem:[#allocation1 + $0x8] sm:$0xff pattern:$0x75316420] }
  0x75   : > { %384 = vrot.lane.b32.xlu0 %v380_v9, %s1729_s7  ;;  %408 = vrot.lane.b32.xlu1 %v405_v12, %s1730_s5  ;;  %429 = vst [vmem:[#allocation1 + $0x1] ss:$2 sm:$0xff] %v2002_v1 }
  0x7a   : > { %v434_v15 = vld.sshfl [vmem:[#allocation1 + $0x10] sm:$0xff pattern:$0x75316420] }
  0x7b   : > { %457 = vst [vmem:[#allocation1 + $0x10] ss:$2 sm:$0xff] %v452_v14  ;;  %v806_v14 = vld [vmem:[%s1994_s14 + $0x8] sm:$0xf] }
  0x7c   : > { %v2021_v16 = vld.sshfl [vmem:[#allocation1] sm:$0xff pattern:$0x75316420]  ;;  %v2023_v17 = vld.sshfl [vmem:[#allocation1 + $0x8] sm:$0xff pattern:$0x75316420] }
  0x7d   : > { %439 = vrot.lane.b32.xlu0 %v434_v15, %s1731_s27  ;;  %455 = vst [vmem:[#allocation1] ss:$2 sm:$0xff] %v2002_v1 }
  0x82   : > { %v460_v19 = vld.sshfl [vmem:[#allocation1 + $0x10] sm:$0xff pattern:$0x75316420] }
  0x83   : > { %465 = vrot.lane.b32.xlu1 %v460_v19, %s1732_s12  ;;  %484 = vst [vmem:[#allocation1 + $0x11] ss:$2 sm:$0xff] %v478_v18 }
  0x84   : > { %v2029_v20 = vld.sshfl [vmem:[#allocation1] sm:$0xff pattern:$0x75316420]  ;;  %v2031_v21 = vld.sshfl [vmem:[#allocation1 + $0x8] sm:$0xff pattern:$0x75316420] }
  0x85   : > { %482 = vst [vmem:[#allocation1 + $0x1] ss:$2 sm:$0xff] %v2002_v1 }
  0x8a   : > { %v487_v23 = vld.sshfl [vmem:[#allocation1 + $0x10] sm:$0xff pattern:$0x75316420] }
  0x8b   : > { %510 = vst [vmem:[#allocation1 + $0x10] ss:$2 sm:$0xff] %v505_v22  ;;  %492 = vrot.lane.b32.xlu2 %v487_v23, %s1733_s30  ;;  %v2112_v22 = vld [vmem:[%s1994_s14] sm:$0xff] }
  0x8c   : > { %v2036_v24 = vld.sshfl [vmem:[#allocation1] sm:$0xff pattern:$0x75316420]  ;;  %v2038_v25 = vld.sshfl [vmem:[#allocation1 + $0x8] sm:$0xff pattern:$0x75316420] }
  0x8d   : > { %508 = vst [vmem:[#allocation1] ss:$2 sm:$0xff] %v2002_v1 }
  0x92   : > { %v513_v27 = vld.sshfl [vmem:[#allocation1 + $0x10] sm:$0xff pattern:$0x75316420] }
  0x93   : > { %518 = vrot.lane.b32.xlu1 %v513_v27, %s1734_s10  ;;  %537 = vst [vmem:[#allocation1 + $0x11] ss:$2 sm:$0xff] %v531_v26 }
  0x94   : > { %v511_v28 = vld.sshfl [vmem:[#allocation1] sm:$0xff pattern:$0x75316420]  ;;  %v2043_v29 = vld.sshfl [vmem:[#allocation1 + $0x8] sm:$0xff pattern:$0x75316420] }
  0x95   : > { %535 = vst [vmem:[#allocation1 + $0x1] ss:$2 sm:$0xff] %v2002_v1 }
  0x9a   : > { %v540_v31 = vld.sshfl [vmem:[#allocation1 + $0x10] sm:$0xff pattern:$0x75316420] }
  0x9b   : > { %514 = vrot.lane.b32.xlu1 %v511_v28, %s1734_s10  ;;  %545 = vrot.lane.b32.xlu2 %v540_v31, %s1735_s11  ;;  %563 = vst [vmem:[#allocation1 + $0x10] ss:$2 sm:$0xff] %v558_v30  ;;  %v822_v30 = vld [vmem:[%s1994_s14 + $0x8] sm:$0xf] }
  0x9c   : > { %v2049_v32 = vld.sshfl [vmem:[#allocation1] sm:$0xff pattern:$0x75316420]  ;;  %v2051_v33 = vld.sshfl [vmem:[#allocation1 + $0x8] sm:$0xff pattern:$0x75316420] }
  0x9d   : > { %561 = vst [vmem:[#allocation1] ss:$2 sm:$0xff] %v2002_v1 }
  0xa2   : > { %v566_v36 = vld.sshfl [vmem:[#allocation1 + $0x10] sm:$0xff pattern:$0x75316420] }
  0xa3   : > { %571 = vrot.lane.b32.xlu2 %v566_v36, %s1736_s15  ;;  %590 = vst [vmem:[#allocation1 + $0x11] ss:$2 sm:$0xff] %v584_v34 }
  0xa4   : > { %v564_v37 = vld.sshfl [vmem:[#allocation1] sm:$0xff pattern:$0x75316420]  ;;  %v565_v38 = vld.sshfl [vmem:[#allocation1 + $0x8] sm:$0xff pattern:$0x75316420] }
  0xa5   : > { %567 = vrot.lane.b32.xlu0 %v564_v37, %s1736_s15  ;;  %569 = vrot.lane.b32.xlu1 %v565_v38, %s1736_s15  ;;  %588 = vst [vmem:[#allocation1 + $0x1] ss:$2 sm:$0xff] %v2056_v35  ;;  %v847_v37 = vld [vmem:[%s1994_s14 + $0x8] sm:$0xf] }
  0xaa   : > { %v2063_v40 = vld.sshfl [vmem:[#allocation1 + $0x10] sm:$0xff pattern:$0x75316420] }
  0xab   : > { %607 = vst [vmem:[#allocation1 + $0x10] ss:$2 sm:$0xff] %v602_v39 }
  0xac   : > { %v591_v41 = vld.sshfl [vmem:[#allocation1] sm:$0xff pattern:$0x75316420]  ;;  %v592_v42 = vld.sshfl [vmem:[#allocation1 + $0x8] sm:$0xff pattern:$0x75316420] }
  0xad   : > { %605 = vst [vmem:[#allocation1] ss:$2 sm:$0xff] %v2056_v35 }
  0xae   : > { %597 = vst [vmem:[#allocation2 + $0x60] sm:$0xf0] %v591_v41 }
  0xaf   : > { %598 = vst [vmem:[#allocation2 + $0x68] sm:$0xf0] %v592_v42 }
  0xb0   : > { %600 = vst.msk [vmem:[#allocation2 + $0x70] sm:$0xf0] %vm599_vm10, %v2063_v40  ;;  %vm752_vm10 = vcmask 261124  }
  0xb2   : > { %v610_v44 = vld.sshfl [vmem:[#allocation1 + $0x10] sm:$0xff pattern:$0x75316420] }
  0xb3   : > { %633 = vst [vmem:[#allocation1 + $0x11] ss:$2 sm:$0xff] %v627_v43  ;;  %615 = vrot.lane.b32.xlu2 %v610_v44, %s1729_s7  ;;  %v871_v43 = vld [vmem:[%s1994_s14 + $0x8] sm:$0xf] }
  0xb4   : > { %v608_v45 = vld.sshfl [vmem:[#allocation1] sm:$0xff pattern:$0x75316420]  ;;  %v609_v46 = vld.sshfl [vmem:[#allocation1 + $0x8] sm:$0xff pattern:$0x75316420] }
  0xb5   : > { %611 = vrot.lane.b32.xlu0 %v608_v45, %s1729_s7  ;;  %613 = vrot.lane.b32.xlu1 %v609_v46, %s1729_s7  ;;  %631 = vst [vmem:[#allocation1 + $0x1] ss:$2 sm:$0xff] %v2056_v35 }
  0xba   : > { %v636_v48 = vld.sshfl [vmem:[#allocation1 + $0x10] sm:$0xff pattern:$0x75316420] }
  0xbb   : > { %658 = vst [vmem:[#allocation1 + $0x10] ss:$2 sm:$0xff] %v653_v47 }
  0xbc   : > { %v635_v49 = vld.sshfl [vmem:[#allocation1 + $0x8] sm:$0xff pattern:$0x75316420]  ;;  %v634_v50 = vld.sshfl [vmem:[#allocation1] sm:$0xff pattern:$0x75316420] }
  0xbd   : > { %641 = vrot.lane.b32.xlu0 %v636_v48, %s1730_s5  ;;  %637 = vrot.lane.b32.xlu2 %v634_v50, %s1730_s5  ;;  %656 = vst [vmem:[#allocation1] ss:$2 sm:$0xff] %v2056_v35  ;;  %v896_v48 = vld [vmem:[%s1994_s14 + $0x8] sm:$0xf] }
  0xc2   : > { %v661_v52 = vld.sshfl [vmem:[#allocation1 + $0x10] sm:$0xff pattern:$0x75316420] }
  0xc3   : > { %684 = vst [vmem:[#allocation1 + $0x11] ss:$2 sm:$0xff] %v678_v51 }
  0xc4   : > { %v660_v53 = vld.sshfl [vmem:[#allocation1 + $0x8] sm:$0xff pattern:$0x75316420]  ;;  %v659_v54 = vld.sshfl [vmem:[#allocation1] sm:$0xff pattern:$0x75316420] }
  0xc5   : > { %639 = vrot.lane.b32.xlu0 %v635_v49, %s1730_s5  ;;  %664 = vrot.lane.b32.xlu1 %v660_v53, %s1731_s27  ;;  %682 = vst [vmem:[#allocation1 + $0x1] ss:$2 sm:$0xff] %v2056_v35 }
  0xc6   : > { %666 = vrot.lane.b32.xlu2 %v661_v52, %s1731_s27 }
  0xca   : > { %v687_v56 = vld.sshfl [vmem:[#allocation1 + $0x10] sm:$0xff pattern:$0x75316420] }
  0xcb   : > { %709 = vst [vmem:[#allocation1 + $0x10] ss:$2 sm:$0xff] %v704_v55 }
  0xcc   : > { %v686_v57 = vld.sshfl [vmem:[#allocation1 + $0x8] sm:$0xff pattern:$0x75316420]  ;;  %v685_v58 = vld.sshfl [vmem:[#allocation1] sm:$0xff pattern:$0x75316420] }
  0xcd   : > { %662 = vrot.lane.b32.xlu0 %v659_v54, %s1731_s27  ;;  %707 = vst [vmem:[#allocation1] ss:$2 sm:$0xff] %v2056_v35  ;;  %v2093_v5 = vpop.permute.xlu2 %412  ;;  %v920_v54 = vld [vmem:[%s1994_s14 + $0x8] sm:$0xf] }
  0xce   : > { %688 = vrot.lane.b32.xlu2 %v685_v58, %s1732_s12  ;;  %423 = vst.msk [vmem:[#allocation2 + $0x28] sm:$0xf] %vm422_vm1, %v2093_v5 }
  0xd2   : > { %v712_v60 = vld.sshfl [vmem:[#allocation1 + $0x10] sm:$0xff pattern:$0x75316420] }
  0xd3   : > { %717 = vrot.lane.b32.xlu1 %v712_v60, %s1733_s30  ;;  %735 = vst [vmem:[#allocation1 + $0x11] ss:$2 sm:$0xff] %v729_v59  ;;  %v945_v59 = vld [vmem:[%s1994_s14 + $0x8] sm:$0xf] }
  0xd4   : > { %v710_v61 = vld.sshfl [vmem:[#allocation1] sm:$0xff pattern:$0x75316420]  ;;  %v711_v62 = vld.sshfl [vmem:[#allocation1 + $0x8] sm:$0xff pattern:$0x75316420] }
  0xd5   : > { %692 = vrot.lane.b32.xlu0 %v687_v56, %s1732_s12  ;;  %733 = vst [vmem:[#allocation1 + $0x1] ss:$2 sm:$0xff] %v2056_v35 }
  0xd6   : > { %715 = vrot.lane.b32.xlu2 %v711_v62, %s1733_s30 }
  0xda   : > { %v738_v0 = vld.sshfl [vmem:[#allocation1 + $0x10] sm:$0xff pattern:$0x75316420] }
  0xdb   : > { %713 = vrot.lane.b32.xlu1 %v710_v61, %s1733_s30  ;;  %760 = vst [vmem:[#allocation1 + $0x10] ss:$2 sm:$0xff] %v755_v63 }
  0xdc   : > { %v737_v1 = vld.sshfl [vmem:[#allocation1 + $0x8] sm:$0xff pattern:$0x75316420]  ;;  %v736_v2 = vld.sshfl [vmem:[#allocation1] sm:$0xff pattern:$0x75316420] }
  0xdd   : > { %690 = vrot.lane.b32.xlu0 %v686_v57, %s1732_s12  ;;  %758 = vst [vmem:[#allocation1] ss:$2 sm:$0xff] %v2056_v35  ;;  %v387_v4 = vpop.permute.xlu1 %386 }
  0xde   : > { %743 = vrot.lane.b32.xlu2 %v738_v0, %s1734_s10  ;;  %397 = vst.msk [vmem:[#allocation2 + $0x10] sm:$0xf0] %vm396_vm0, %v387_v4 }
  0xdf   : > { %v383_v6 = vpop.permute.xlu0 %382 }
  0xe2   : > { %v763_v8 = vld.sshfl [vmem:[#allocation1 + $0x10] sm:$0xff pattern:$0x75316420] }
  0xe3   : > { %741 = vrot.lane.b32.xlu1 %v737_v1, %s1734_s10  ;;  %786 = vst [vmem:[#allocation1 + $0x11] ss:$2 sm:$0xff] %v780_v7 }
  0xe4   : > { %v762_v9 = vld.sshfl [vmem:[#allocation1 + $0x8] sm:$0xff pattern:$0x75316420]  ;;  %v761_v10 = vld.sshfl [vmem:[#allocation1] sm:$0xff pattern:$0x75316420] }
  0xe5   : > { %739 = vrot.lane.b32.xlu0 %v736_v2, %s1734_s10  ;;  %784 = vst [vmem:[#allocation1 + $0x1] ss:$2 sm:$0xff] %v2056_v35  ;;  %v2103_v11 = vpop.permute.xlu2 %492  ;;  %v969_v2 = vld [vmem:[%s1994_s14 + $0x8] sm:$0xf] }
  0xe6   : > { %766 = vrot.lane.b32.xlu2 %v762_v9, %s1735_s11  ;;  %503 = vst.msk [vmem:[#allocation2 + $0x40] sm:$0xf0] %vm502_vm2, %v2103_v11 }
  0xe7   : > { %v385_v12 = vpop.permute.xlu0 %384  ;;  %v2118_v27 = vpop.permute.xlu1 %408 }
  0xe8   : > { %v389_v15 = vsel %vm388_vm3, %v383_v6, %v385_v12  ;;  %v390_v18 = vsel %vm388_vm3, %v385_v12, %v387_v4 }
  0xe9   : > { %394 = vst [vmem:[#allocation2] sm:$0xf0] %v389_v15 }
  0xea   : > { %v789_v19 = vld.sshfl [vmem:[#allocation1 + $0x10] sm:$0xff pattern:$0x75316420]  ;;  %395 = vst [vmem:[#allocation2 + $0x8] sm:$0xf0] %v390_v18 }
  0xeb   : > { %768 = vrot.lane.b32.xlu1 %v763_v8, %s1735_s11  ;;  %811 = vst [vmem:[#allocation1 + $0x10] ss:$2 sm:$0xff] %v806_v14  ;;  %v994_v18 = vld [vmem:[%s1994_s14 + $0x8] sm:$0xf]  ;;  %s1334_s14 = smul.u32 24, %s1975_s18 }
  0xec   : > { %v787_v23 = vld.sshfl [vmem:[#allocation1] sm:$0xff pattern:$0x75316420]  ;;  %v788_v26 = vld.sshfl [vmem:[#allocation1 + $0x8] sm:$0xff pattern:$0x75316420] }
  0xed   : > { %790 = vrot.lane.b32.xlu0 %v787_v23, %s1736_s15  ;;  %809 = vst [vmem:[#allocation1] ss:$2 sm:$0xff] %v2112_v22 }
  0xee   : > { %794 = vrot.lane.b32.xlu2 %v789_v19, %s1736_s15 }
  0xef   : > { %v2120_v28 = vpop.permute.xlu0 %439 }
  0xf0   : > { %450 = vst.msk [vmem:[#allocation2 + $0x28] sm:$0xf0] %vm449_vm4, %v2120_v28 }
  0xf2   : > { %v814_v31 = vld.sshfl [vmem:[#allocation1 + $0x10] sm:$0xff pattern:$0x75316420] }
  0xf3   : > { %764 = vrot.lane.b32.xlu1 %v761_v10, %s1735_s11  ;;  %828 = vst [vmem:[#allocation1 + $0x11] ss:$2 sm:$0xff] %v822_v30 }
  0xf4   : > { %v812_v34 = vld.sshfl [vmem:[#allocation1] sm:$0xff pattern:$0x75316420]  ;;  %v813_v35 = vld.sshfl [vmem:[#allocation1 + $0x8] sm:$0xff pattern:$0x75316420] }
  0xf5   : > { %826 = vst [vmem:[#allocation1 + $0x1] ss:$2 sm:$0xff] %v2112_v22  ;;  %v2129_v36 = vpop.permute.xlu2 %545  ;;  %v2134_v3 = vpop.permute.xlu1 %465 }
  0xf6   : > { %818 = vst [vmem:[#allocation2 + $0xd8] sm:$0xf] %v812_v34 }
  0xf7   : > { %819 = vst [vmem:[#allocation2 + $0xe0] sm:$0xf] %v813_v35 }
  0xf8   : > { %556 = vst.msk [vmem:[#allocation2 + $0x58] sm:$0xf0] %vm2368_vm6, %v2129_v36  ;;  %vm467_vm6 = vcmask 891904  }
  0xf9   : > { %476 = vst.msk [vmem:[#allocation2 + $0x40] sm:$0xf] %vm475_vm7, %v2134_v3 }
  0xfa   : > { %v831_v38 = vld.sshfl [vmem:[#allocation1 + $0x10] sm:$0xff pattern:$0x75316420]  ;;  %820 = vst.msk [vmem:[#allocation2 + $0xe8] sm:$0xf] %vm369_vm5, %v814_v31  ;;  %vm441_vm5 = vcmask 900096  }
  0xfb   : > { %792 = vrot.lane.b32.xlu1 %v788_v26, %s1736_s15  ;;  %836 = vrot.lane.b32.xlu2 %v831_v38, %s1729_s7  ;;  %852 = vst [vmem:[#allocation1 + $0x10] ss:$2 sm:$0xff] %v847_v37 }
  0xfc   : > { %v829_v39 = vld.sshfl [vmem:[#allocation1] sm:$0xff pattern:$0x75316420]  ;;  %v830_v41 = vld.sshfl [vmem:[#allocation1 + $0x8] sm:$0xff pattern:$0x75316420] }
  0xfd   : > { %832 = vrot.lane.b32.xlu0 %v829_v39, %s1729_s7  ;;  %850 = vst [vmem:[#allocation1] ss:$2 sm:$0xff] %v2112_v22  ;;  %v572_v42 = vpop.permute.xlu2 %571 }
  0xfe   : > { %582 = vst.msk [vmem:[#allocation2 + $0x70] sm:$0xf] %vm581_vm8, %v572_v42 }
 0x102   : > { %v855_v44 = vld.sshfl [vmem:[#allocation1 + $0x10] sm:$0xff pattern:$0x75316420] }
 0x103   : > { %834 = vrot.lane.b32.xlu1 %v830_v41, %s1729_s7  ;;  %860 = vrot.lane.b32.xlu2 %v855_v44, %s1730_s5  ;;  %877 = vst [vmem:[#allocation1 + $0x11] ss:$2 sm:$0xff] %v871_v43  ;;  %s1335_s7 = smul.u32 3, %s2398_s17 }
 0x104   : > { %v853_v45 = vld.sshfl [vmem:[#allocation1] sm:$0xff pattern:$0x75316420]  ;;  %v854_v46 = vld.sshfl [vmem:[#allocation1 + $0x8] sm:$0xff pattern:$0x75316420] }
 0x105   : > { %856 = vrot.lane.b32.xlu0 %v853_v45, %s1730_s5  ;;  %875 = vst [vmem:[#allocation1 + $0x1] ss:$2 sm:$0xff] %v2112_v22  ;;  %v2149_v47 = vpop.permute.xlu1 %518 }
 0x106   : > { %529 = vst.msk [vmem:[#allocation2 + $0x58] sm:$0xf] %vm528_vm9, %v2149_v47 }
 0x10a   : > { %v880_v49 = vld.sshfl [vmem:[#allocation1 + $0x10] sm:$0xff pattern:$0x75316420] }
 0x10b   : > { %858 = vrot.lane.b32.xlu1 %v854_v46, %s1730_s5  ;;  %901 = vst [vmem:[#allocation1 + $0x10] ss:$2 sm:$0xff] %v896_v48 }
 0x10c   : > { %v879_v50 = vld.sshfl [vmem:[#allocation1 + $0x8] sm:$0xff pattern:$0x75316420]  ;;  %v878_v51 = vld.sshfl [vmem:[#allocation1] sm:$0xff pattern:$0x75316420] }
 0x10d   : > { %885 = vrot.lane.b32.xlu0 %v880_v49, %s1731_s27  ;;  %881 = vrot.lane.b32.xlu2 %v878_v51, %s1731_s27  ;;  %899 = vst [vmem:[#allocation1] ss:$2 sm:$0xff] %v2112_v22  ;;  %v616_v52 = vpop.permute.xlu2 %615  ;;  %v2159_v53 = vpop.permute.xlu1 %514 }
 0x10e   : > { %625 = vst.msk [vmem:[#allocation2 + $0x88] sm:$0xf] %vm624_vm11, %v616_v52  ;;  %vm494_vm11 = vcmask 883712  }
 0x112   : > { %v904_v40 = vld.sshfl [vmem:[#allocation1 + $0x10] sm:$0xff pattern:$0x75316420] }
 0x113   : > { %909 = vrot.lane.b32.xlu1 %v904_v40, %s1732_s12  ;;  %926 = vst [vmem:[#allocation1 + $0x11] ss:$2 sm:$0xff] %v920_v54 }
 0x114   : > { %v903_v55 = vld.sshfl [vmem:[#allocation1 + $0x8] sm:$0xff pattern:$0x75316420]  ;;  %v902_v56 = vld.sshfl [vmem:[#allocation1] sm:$0xff pattern:$0x75316420] }
 0x115   : > { %883 = vrot.lane.b32.xlu0 %v879_v50, %s1731_s27  ;;  %924 = vst [vmem:[#allocation1 + $0x1] ss:$2 sm:$0xff] %v2112_v22 }
 0x117   : > { %v568_v57 = vpop.permute.xlu0 %567  ;;  %v570_v58 = vpop.permute.xlu1 %569 }
 0x118   : > { %v574_v60 = vsel %vm573_vm12, %v568_v57, %v570_v58  ;;  %v575_v61 = vsel %vm573_vm12, %v570_v58, %v572_v42  ;;  %v638_v62 = vpop.permute.xlu2 %637 }
 0x119   : > { %579 = vst [vmem:[#allocation2 + $0x60] sm:$0xf] %v574_v60 }
 0x11a   : > { %v929_v63 = vld.sshfl [vmem:[#allocation1 + $0x10] sm:$0xff pattern:$0x75316420]  ;;  %580 = vst [vmem:[#allocation2 + $0x68] sm:$0xf] %v575_v61 }
 0x11b   : > { %950 = vst [vmem:[#allocation1 + $0x10] ss:$2 sm:$0xff] %v945_v59  ;;  %934 = vrot.lane.b32.xlu2 %v929_v63, %s1733_s30  ;;  %907 = vrot.lane.b32.xlu1 %v903_v55, %s1732_s12 }
 0x11c   : > { %v928_v0 = vld.sshfl [vmem:[#allocation1 + $0x8] sm:$0xff pattern:$0x75316420]  ;;  %v927_v1 = vld.sshfl [vmem:[#allocation1] sm:$0xff pattern:$0x75316420] }
 0x11d   : > { %905 = vrot.lane.b32.xlu0 %v902_v56, %s1732_s12  ;;  %948 = vst [vmem:[#allocation1] ss:$2 sm:$0xff] %v2112_v22 }
 0x120   : > { %v667_v4 = vpop.permute.xlu2 %666 }
 0x121   : > { %676 = vst.msk [vmem:[#allocation2 + $0xa0] sm:$0xf] %vm675_vm13, %v667_v4  ;;  %vm726_vm13 = vcmask 388096  }
 0x122   : > { %v953_v6 = vld.sshfl [vmem:[#allocation1 + $0x10] sm:$0xff pattern:$0x75316420] }
 0x123   : > { %930 = vrot.lane.b32.xlu2 %v927_v1, %s1733_s30  ;;  %975 = vst [vmem:[#allocation1 + $0x11] ss:$2 sm:$0xff] %v969_v2 }
 0x124   : > { %v951_v7 = vld.sshfl [vmem:[#allocation1] sm:$0xff pattern:$0x75316420]  ;;  %v952_v8 = vld.sshfl [vmem:[#allocation1 + $0x8] sm:$0xff pattern:$0x75316420] }
 0x125   : > { %932 = vrot.lane.b32.xlu0 %v928_v0, %s1733_s30  ;;  %954 = vrot.lane.b32.xlu1 %v951_v7, %s1734_s10  ;;  %973 = vst [vmem:[#allocation1 + $0x1] ss:$2 sm:$0xff] %v2112_v22 }
 0x127   : > { %v612_v9 = vpop.permute.xlu0 %611  ;;  %v614_v10 = vpop.permute.xlu1 %613 }
 0x128   : > { %v617_v12 = vsel %vm388_vm3, %v612_v9, %v614_v10  ;;  %v618_v14 = vsel %vm388_vm3, %v614_v10, %v616_v52  ;;  %v2179_v15 = vpop.permute.xlu2 %688 }
 0x129   : > { %622 = vst [vmem:[#allocation2 + $0x78] sm:$0xf] %v617_v12 }
 0x12a   : > { %v978_v19 = vld.sshfl [vmem:[#allocation1 + $0x10] sm:$0xff pattern:$0x75316420]  ;;  %623 = vst [vmem:[#allocation2 + $0x80] sm:$0xf] %v618_v14 }
 0x12b   : > { %958 = vrot.lane.b32.xlu2 %v953_v6, %s1734_s10  ;;  %999 = vst [vmem:[#allocation1 + $0x10] ss:$2 sm:$0xff] %v994_v18 }
 0x12c   : > { %v977_v23 = vld.sshfl [vmem:[#allocation1 + $0x8] sm:$0xff pattern:$0x75316420]  ;;  %v976_v26 = vld.sshfl [vmem:[#allocation1] sm:$0xff pattern:$0x75316420] }
 0x12d   : > { %983 = vrot.lane.b32.xlu0 %v978_v19, %s1735_s11  ;;  %981 = vrot.lane.b32.xlu1 %v977_v23, %s1735_s11  ;;  %997 = vst [vmem:[#allocation1] ss:$2 sm:$0xff] %v2112_v22 }
 0x12f   : > { %v642_v30 = vpop.permute.xlu0 %641 }
 0x130   : > { %651 = vst.msk [vmem:[#allocation2 + $0x88] sm:$0xf0] %vm650_vm14, %v642_v30  ;;  %v716_v31 = vpop.permute.xlu2 %715  ;;  %vm701_vm14 = vcmask 400388  }
 0x132   : > { %v1002_v41 = vld.sshfl [vmem:[#allocation1 + $0x10] sm:$0xff pattern:$0x75316420] }
 0x133   : > { %956 = vrot.lane.b32.xlu2 %v952_v8, %s1734_s10 }
 0x134   : > { %v1001_v34 = vld.sshfl [vmem:[#allocation1 + $0x8] sm:$0xff pattern:$0x75316420]  ;;  %v1000_v43 = vld.sshfl [vmem:[#allocation1] sm:$0xff pattern:$0x75316420] }
 0x135   : > { %979 = vrot.lane.b32.xlu0 %v976_v26, %s1735_s11  ;;  %1005 = vrot.lane.b32.xlu1 %v1001_v34, %s1736_s15 }
 0x137   : > { %v640_v35 = vpop.permute.xlu0 %639  ;;  %v665_v37 = vpop.permute.xlu1 %664 }
 0x138   : > { %v643_v38 = vsel %vm414_vm15, %v638_v62, %v640_v35  ;;  %v644_v39 = vsel %vm414_vm15, %v640_v35, %v642_v30  ;;  %v669_v22 = vsel %vm441_vm5, %v665_v37, %v667_v4  ;;  %v744_v42 = vpop.permute.xlu2 %743 }
 0x139   : > { %648 = vst [vmem:[#allocation2 + $0x78] sm:$0xf0] %v643_v38 }
 0x13a   : > { %649 = vst [vmem:[#allocation2 + $0x80] sm:$0xf0] %v644_v39 }
 0x13b   : > { %1007 = vrot.lane.b32.xlu2 %v1002_v41, %s1736_s15  ;;  %674 = vst [vmem:[#allocation2 + $0x98] sm:$0xf] %v669_v22 }
 0x13c   : > { %753 = vst.msk [vmem:[#allocation2 + $0xb8] sm:$0xf0] %vm752_vm10, %v744_v42  ;;  %vm803_vm10 = vcmask 244740  }
 0x13d   : > { %543 = vrot.lane.b32.xlu1 %v2051_v33, %s1735_s11  ;;  %1003 = vrot.lane.b32.xlu0 %v1000_v43, %s1736_s15  ;;  %s2400_s15 = sld [smem:[#allocation26_spill]] }
 0x13f   : > { %v663_v44 = vpop.permute.xlu0 %662 }
 0x140   : > { %v668_v45 = vsel %vm441_vm5, %v663_v44, %v665_v37  ;;  %v767_v46 = vpop.permute.xlu2 %766 }
 0x141   : > { %673 = vst [vmem:[#allocation2 + $0x90] sm:$0xf] %v668_v45 }
 0x143   : > { %516 = vrot.lane.b32.xlu2 %v2043_v29, %s1734_s10 }
 0x145   : > { %541 = vrot.lane.b32.xlu0 %v2049_v32, %s1735_s11  ;;  %v718_v48 = vpop.permute.xlu1 %717  ;;  %488 = vrot.lane.b32.xlu1 %v2036_v24, %s1733_s30 }
 0x146   : > { %v720_v33 = vsel %vm494_vm11, %v716_v31, %v718_v48  ;;  %727 = vst.msk [vmem:[#allocation2 + $0xb8] sm:$0xf] %vm726_vm13, %v718_v48  ;;  %vm520_vm13 = vcmask 752640  }
 0x147   : > { %725 = vst [vmem:[#allocation2 + $0xb0] sm:$0xf] %v720_v33  ;;  %v693_v49 = vpop.permute.xlu0 %692 }
 0x148   : > { %702 = vst.msk [vmem:[#allocation2 + $0xa0] sm:$0xf0] %vm701_vm14, %v693_v49  ;;  %v795_v50 = vpop.permute.xlu2 %794  ;;  %vm547_vm14 = vcmask 744448  }
 0x149   : > { %804 = vst.msk [vmem:[#allocation2 + $0xd0] sm:$0xf0] %vm803_vm10, %v795_v50  ;;  %vm777_vm10 = vcmask 248832  }
 0x14b   : > { %461 = vrot.lane.b32.xlu2 %v2029_v20, %s1732_s12 }
 0x14d   : > { %463 = vrot.lane.b32.xlu0 %v2031_v21, %s1732_s12  ;;  %v714_v29 = vpop.permute.xlu1 %713  ;;  %435 = vrot.lane.b32.xlu1 %v2021_v16, %s1731_s27  ;;  %s351_s12 = scalar_lea.vmem [#allocation9], %s1334_s14  ;;  %s1593_s14 = scalar_lea.hbm %s2400_s15, 384 }
 0x14e   : > { %v719_v24 = vsel %vm494_vm11, %v714_v29, %v716_v31  ;;  %s1168_s8 = sshll.u32 %s351_s12, 4  ;;  %s1169_s8 = int_to_ptr.vmem [resolvable:$true] %s1168_s8 }
 0x14f   : > { %v691_v32 = vpop.permute.xlu0 %690  ;;  %724 = vst [vmem:[#allocation2 + $0xa8] sm:$0xf] %v719_v24 }
 0x150   : > { %v694_v51 = vsel %vm467_vm6, %v2179_v15, %v691_v32  ;;  %v695_v52 = vsel %vm467_vm6, %v691_v32, %v693_v49 }
 0x151   : > { %699 = vst [vmem:[#allocation2 + $0x90] sm:$0xf0] %v694_v51 }
 0x152   : > { %700 = vst [vmem:[#allocation2 + $0x98] sm:$0xf0] %v695_v52 }
 0x153   : > { %490 = vrot.lane.b32.xlu2 %v2038_v25, %s1733_s30 }
 0x155   : > { %410 = vrot.lane.b32.xlu0 %v2015_v13, %s1730_s5  ;;  %v742_v20 = vpop.permute.xlu1 %741  ;;  %v837_v16 = vpop.permute.xlu2 %836  ;;  %s1336_s5 = smul.u32 24, %s2399_s21 }
 0x156   : > { %v746_v21 = vsel %vm520_vm13, %v742_v20, %v744_v42  ;;  %845 = vst.msk [vmem:[#allocation2 + $0xe8] sm:$0xf0] %vm396_vm0, %v837_v16  ;;  %vm1069_vm0 = vcmask 1043456  }
 0x157   : > { %751 = vst [vmem:[#allocation2 + $0xb0] sm:$0xf0] %v746_v21  ;;  %v740_v54 = vpop.permute.xlu0 %739 }
 0x158   : > { %v745_v40 = vsel %vm520_vm13, %v740_v54, %v742_v20 }
 0x159   : > { %750 = vst [vmem:[#allocation2 + $0xa8] sm:$0xf0] %v745_v40 }
 0x15b   : > { %437 = vrot.lane.b32.xlu2 %v2023_v17, %s1731_s27  ;;  %s1164_s27 = sadd.s32 %s1336_s5, %s1335_s7 }
 0x15c   : > { %s1323_s30 = sshll.u32 %s1164_s27, 3 }
 0x15d   : > { %v769_v25 = vpop.permute.xlu1 %768  ;;  %v861_v13 = vpop.permute.xlu2 %860  ;;  %v1047_v20 = vld [vmem:[#allocation2 + $0xe8] sm:$0xff]  ;;  %s1166_s29 = scalar_lea.hbm %s2400_s15, %s1323_s30 }
 0x15e   : > { %v771_v55 = vsel %vm547_vm14, %v767_v46, %v769_v25  ;;  %778 = vst.msk [vmem:[#allocation2 + $0xd0] sm:$0xf] %vm777_vm10, %v769_v25 }
 0x15f   : > { %776 = vst [vmem:[#allocation2 + $0xc8] sm:$0xf] %v771_v55  ;;  %v791_v57 = vpop.permute.xlu0 %790 }
 0x160   : > { %869 = vst.msk [vmem:[#allocation2 + $0x100] sm:$0xf] %vm422_vm1, %v861_v13  ;;  %vm2395_vm1 = vcmask 252932  }
 0x165   : > { %v765_v56 = vpop.permute.xlu1 %764  ;;  %v1044_v25 = vld [vmem:[#allocation2 + $0xd0] sm:$0xff] }
 0x166   : > { %v770_v58 = vsel %vm547_vm14, %v765_v56, %v767_v46 }
 0x167   : > { %775 = vst [vmem:[#allocation2 + $0xc0] sm:$0xf] %v770_v58  ;;  %v882_v59 = vpop.permute.xlu2 %881 }
 0x16d   : > { %v793_v60 = vpop.permute.xlu1 %792 }
 0x16e   : > { %v796_v61 = vsel %vm573_vm12, %v791_v57, %v793_v60  ;;  %v797_v17 = vsel %vm573_vm12, %v793_v60, %v795_v50  ;;  %v1041_v57 = vld [vmem:[#allocation2 + $0xb8] sm:$0xff]  ;;  %v1035_v60 = vld [vmem:[#allocation2 + $0x88] sm:$0xff] }
 0x16f   : > { %801 = vst [vmem:[#allocation2 + $0xc0] sm:$0xf0] %v796_v61  ;;  %v833_v62 = vpop.permute.xlu0 %832 }
 0x170   : > { %802 = vst [vmem:[#allocation2 + $0xc8] sm:$0xf0] %v797_v17  ;;  %v1060_v17 = vld [vmem:[%s2396_s4] sm:$0xff]  ;;  %s1170_s4 = sshll.u32 %s1166_s29, 4  ;;  %s1171_s4 = int_to_ptr.hbm [resolvable:$true] %s1170_s4 }
 0x171   : > { %s1587_s22 = sshra.s32 %s1171_s4, 4  ;;  %s1588_s22 = int_to_ptr.hbm [resolvable:$true] %s1587_s22 }
 0x172   : > { %p1594_p9 = scmp.lt.s32.totalorder %s1588_s22, %s2400_s15 }
 0x175   : > { %v835_v63 = vpop.permute.xlu1 %834  ;;  %v935_v0 = vpop.permute.xlu2 %934 }
 0x176   : > { %v838_v1 = vsel %vm388_vm3, %v833_v62, %v835_v63  ;;  %v839_v2 = vsel %vm388_vm3, %v835_v63, %v837_v16  ;;  %943 = vst.msk [vmem:[#allocation2 + $0x118] sm:$0xf0] %vm502_vm2, %v935_v0  ;;  %vm1150_vm2 = vcmask 556032  }
 0x177   : > { %843 = vst [vmem:[#allocation2 + $0xd8] sm:$0xf0] %v838_v1  ;;  %v857_v4 = vpop.permute.xlu0 %856 }
 0x178   : > { %844 = vst [vmem:[#allocation2 + $0xe0] sm:$0xf0] %v839_v2  ;;  %v1737_v2 = vmov 0  }
 0x179   : > { %1482 = vset.pattern.permute.xlu0 %v1737_v2 }
 0x17a   : > { %1063 = vperm.xlu0 %1482, %v1060_v17  }
 0x17d   : > { %v859_v6 = vpop.permute.xlu1 %858  ;;  %v931_v7 = vpop.permute.xlu2 %930 }
 0x17e   : > { %v862_v8 = vsel %vm414_vm15, %v857_v4, %v859_v6  ;;  %v863_v9 = vsel %vm414_vm15, %v859_v6, %v861_v13 }
 0x17f   : > { %867 = vst [vmem:[#allocation2 + $0xf0] sm:$0xf] %v862_v8  ;;  %v886_v10 = vpop.permute.xlu0 %885  ;;  %v1029_v8 = vld [vmem:[#allocation2 + $0x58] sm:$0xff] }
 0x180   : > { %868 = vst [vmem:[#allocation2 + $0xf8] sm:$0xf] %v863_v9 }
 0x181   : > { %894 = vst.msk [vmem:[#allocation2 + $0x100] sm:$0xf0] %vm449_vm4, %v886_v10 }
 0x185   : > { %v910_v12 = vpop.permute.xlu1 %909  ;;  %v959_v14 = vpop.permute.xlu2 %958 }
 0x186   : > { %918 = vst.msk [vmem:[#allocation2 + $0x118] sm:$0xf] %vm475_vm7, %v910_v12 }
 0x187   : > { %v884_v15 = vpop.permute.xlu0 %883  ;;  %967 = vst.msk [vmem:[#allocation2 + $0x130] sm:$0xf] %vm528_vm9, %v959_v14 }
 0x188   : > { %v887_v18 = vsel %vm441_vm5, %v882_v59, %v884_v15  ;;  %v888_v19 = vsel %vm441_vm5, %v884_v15, %v886_v10  ;;  %v1050_v52 = vld [vmem:[#allocation2 + $0x100] sm:$0xff]  ;;  %v1043_v10 = vld [vmem:[#allocation2 + $0xc8] sm:$0xff]  ;;  %v1040_v15 = vld [vmem:[#allocation2 + $0xb0] sm:$0xff] }
 0x189   : > { %892 = vst [vmem:[#allocation2 + $0xf0] sm:$0xf0] %v887_v18  ;;  %v1038_v59 = vld [vmem:[#allocation2 + $0xa0] sm:$0xff]  ;;  %v1023_v18 = vld [vmem:[#allocation2 + $0x28] sm:$0xff] }
 0x18a   : > { %893 = vst [vmem:[#allocation2 + $0xf8] sm:$0xf0] %v888_v19  ;;  %v1037_v19 = vld [vmem:[#allocation2 + $0x98] sm:$0xff] }
 0x18d   : > { %v908_v23 = vpop.permute.xlu1 %907  ;;  %v957_v26 = vpop.permute.xlu2 %956  ;;  %v1053_v51 = vld [vmem:[#allocation2 + $0x118] sm:$0xff] }
 0x18e   : > { %v912_v30 = vsel %vm467_vm6, %v908_v23, %v910_v12  ;;  %v961_v31 = vsel %vm520_vm13, %v957_v26, %v959_v14  ;;  %v1026_v12 = vld [vmem:[#allocation2 + $0x40] sm:$0xff] }
 0x18f   : > { %917 = vst [vmem:[#allocation2 + $0x110] sm:$0xf] %v912_v30  ;;  %v906_v34 = vpop.permute.xlu0 %905 }
 0x190   : > { %v911_v35 = vsel %vm467_vm6, %v906_v34, %v908_v23  ;;  %966 = vst [vmem:[#allocation2 + $0x128] sm:$0xf] %v961_v31  ;;  %v1048_v23 = vld [vmem:[#allocation2 + $0xf0] sm:$0xff] }
 0x191   : > { %916 = vst [vmem:[#allocation2 + $0x108] sm:$0xf] %v911_v35  ;;  %v1049_v62 = vld [vmem:[#allocation2 + $0xf8] sm:$0xff]  ;;  %v1020_v35 = vld [vmem:[#allocation2 + $0x10] sm:$0xff] }
 0x195   : > { %v1008_v37 = vpop.permute.xlu2 %1007 }
 0x196   : > { %1016 = vst.msk [vmem:[#allocation2 + $0x148] sm:$0xf] %vm581_vm8, %v1008_v37 }
 0x197   : > { %v933_v38 = vpop.permute.xlu0 %932  ;;  %v955_v39 = vpop.permute.xlu1 %954 }
 0x198   : > { %v936_v41 = vsel %vm494_vm11, %v931_v7, %v933_v38  ;;  %v937_v22 = vsel %vm494_vm11, %v933_v38, %v935_v0  ;;  %v960_v42 = vsel %vm520_vm13, %v955_v39, %v957_v26  ;;  %v1032_v0 = vld [vmem:[#allocation2 + $0x70] sm:$0xff]  ;;  %v1017_v38 = vld [vmem:[%s2397_s1] sm:$0xff]  ;;  %s1589_s1 = scalar_lea.hbm %s1588_s22, 24 }
 0x199   : > { %941 = vst [vmem:[#allocation2 + $0x108] sm:$0xf0] %v936_v41  ;;  %v1045_v39 = vld [vmem:[#allocation2 + $0xd8] sm:$0xff]  ;;  %v1034_v41 = vld [vmem:[#allocation2 + $0x80] sm:$0xff]  ;;  %p1590_p1 = scmp.ne.s32.totalorder %s1588_s22, %s1589_s1  ;;  %p1595_p10 = scmp.lt.s32.totalorder %s1593_s14, %s1589_s1 }
 0x19a   : > { %942 = vst [vmem:[#allocation2 + $0x110] sm:$0xf0] %v937_v22  ;;  %v1042_v22 = vld [vmem:[#allocation2 + $0xc0] sm:$0xff] }
 0x19b   : > { %965 = vst [vmem:[#allocation2 + $0x120] sm:$0xf] %v960_v42  ;;  %v1031_v42 = vld [vmem:[#allocation2 + $0x68] sm:$0xff]  ;;  %p1591_p2 = pnand %p1590_p1, %p1931_p12  ;;  %p1596_p0 = por %p1595_p10, %p1594_p9 }
 0x19d   : > { %v517_v43 = vpop.permute.xlu2 %516  ;;  %v1059_v44 = vld [vmem:[#allocation2 + $0x148] sm:$0xf]  ;;  %p1592_p7 = pneg %p1591_p2 }
 0x19e   : > { %v521_v45 = vsel %vm520_vm13, %v2159_v53, %v517_v43  ;;  %v522_v46 = vsel %vm520_vm13, %v517_v43, %v2149_v47  ;;  %1321 = vmatpush.msk.msra.mxu2 %vm1069_vm0, %v1059_v44 }
 0x19f   : > { %v984_v48 = vpop.permute.xlu0 %983  ;;  %526 = vst [vmem:[#allocation2 + $0x48] sm:$0xf] %v521_v45  ;;  %v982_v33 = vpop.permute.xlu1 %981  ;;  %v1036_v45 = vld [vmem:[#allocation2 + $0x90] sm:$0xff]  ;;  %p1597_p11 = pnand %p1596_p0, %p1592_p7 }
 0x1a0   : > { %992 = vst.msk [vmem:[#allocation2 + $0x130] sm:$0xf0] %vm2395_vm1, %v984_v48  ;;  %v986_v49 = vsel %vm547_vm14, %v982_v33, %v984_v48  ;;  %v1051_v14 = vld [vmem:[#allocation2 + $0x108] sm:$0xff] }
 0x1a1   : > { %527 = vst [vmem:[#allocation2 + $0x50] sm:$0xf] %v522_v46 }
 0x1a2   : > { %991 = vst [vmem:[#allocation2 + $0x128] sm:$0xf0] %v986_v49 }
 0x1a5   : > { %v2252_v50 = vpop.permute.xlu2 %461 }
 0x1a7   : > { %v980_v29 = vpop.permute.xlu0 %979  ;;  %v1006_v24 = vpop.permute.xlu1 %1005  ;;  %v1056_v32 = vld [vmem:[#allocation2 + $0x130] sm:$0xff] }
 0x1a8   : > { %v985_v53 = vsel %vm547_vm14, %v980_v29, %v982_v33  ;;  %v1010_v47 = vsel %vm573_vm12, %v1006_v24, %v1008_v37  ;;  %1122 = vmatpush.msra.mxu2 %v1056_v32  ;;  %v1033_v33 = vld [vmem:[#allocation2 + $0x78] sm:$0xff] }
 0x1a9   : > { %990 = vst [vmem:[#allocation2 + $0x120] sm:$0xf0] %v985_v53  ;;  %v1055_v58 = vld [vmem:[#allocation2 + $0x128] sm:$0xff] }
 0x1aa   : > { %1015 = vst [vmem:[#allocation2 + $0x140] sm:$0xf] %v1010_v47  ;;  %1123 = vmatpush.msra.mxu2 %v1053_v51  ;;  %v1019_v53 = vld [vmem:[#allocation2 + $0x8] sm:$0xff] }
 0x1ac   : > { %1124 = vmatpush.msra.mxu2 %v1050_v52 }
 0x1ad   : > { %v491_v16 = vpop.permute.xlu2 %490 }
 0x1ae   : > { %1125 = vmatpush.msra.mxu2 %v1047_v20  ;;  %v496_v21 = vsel %vm494_vm11, %v491_v16, %v2103_v11  ;;  %v1052_v11 = vld [vmem:[#allocation2 + $0x110] sm:$0xff] }
 0x1af   : > { %501 = vst [vmem:[#allocation2 + $0x38] sm:$0xf0] %v496_v21  ;;  %v544_v54 = vpop.permute.xlu1 %543  ;;  %v1004_v40 = vpop.permute.xlu0 %1003 }
 0x1b0   : > { %v549_v55 = vsel %vm547_vm14, %v544_v54, %v2129_v36  ;;  %v1009_v13 = vsel %vm573_vm12, %v1004_v40, %v1006_v24  ;;  %1126 = vmatpush.msra.mxu2 %v1044_v25  ;;  %v1054_v9 = vld [vmem:[#allocation2 + $0x120] sm:$0xff] }
 0x1b1   : > { %554 = vst [vmem:[#allocation2 + $0x50] sm:$0xf0] %v549_v55  ;;  %v1058_v56 = vld [vmem:[#allocation2 + $0x140] sm:$0xf] }
 0x1b2   : > { %1014 = vst [vmem:[#allocation2 + $0x138] sm:$0xf] %v1009_v13  ;;  %1319 = vmatpush.msk.msra.mxu1 %vm1069_vm0, %v1058_v56  ;;  %1127 = vmatpush.msra.mxu2 %v1041_v57 }
 0x1b4   : > { %1102 = vmatpush.msra.mxu1 %v1055_v58  ;;  %1128 = vmatpush.msra.mxu2 %v1038_v59 }
 0x1b5   : > { %v438_v61 = vpop.permute.xlu2 %437 }
 0x1b6   : > { %1103 = vmatpush.msra.mxu1 %v1052_v11  ;;  %1129 = vmatpush.msra.mxu2 %v1035_v60  ;;  %v443_v36 = vsel %vm441_vm5, %v438_v61, %v2120_v28  ;;  %v1046_v28 = vld [vmem:[#allocation2 + $0xe0] sm:$0xff] }
 0x1b7   : > { %448 = vst [vmem:[#allocation2 + $0x20] sm:$0xf0] %v443_v36  ;;  %v542_v63 = vpop.permute.xlu0 %541  ;;  %v489_v1 = vpop.permute.xlu1 %488 }
 0x1b8   : > { %1104 = vmatpush.msra.mxu1 %v1049_v62  ;;  %v548_v4 = vsel %vm547_vm14, %v542_v63, %v544_v54  ;;  %1130 = vmatpush.msra.mxu2 %v1032_v0  ;;  %v495_v6 = vsel %vm494_vm11, %v489_v1, %v491_v16  ;;  %v1028_v43 = vld [vmem:[#allocation2 + $0x50] sm:$0xff] }
 0x1b9   : > { %553 = vst [vmem:[#allocation2 + $0x48] sm:$0xf0] %v548_v4  ;;  %v1057_v7 = vld [vmem:[#allocation2 + $0x138] sm:$0xf] }
 0x1ba   : > { %1317 = vmatpush.msk.msra.mxu0 %vm1069_vm0, %v1057_v7  ;;  %1105 = vmatpush.msra.mxu1 %v1046_v28  ;;  %500 = vst [vmem:[#allocation2 + $0x30] sm:$0xf0] %v495_v6 }
 0x1bb   : > { %1131 = vmatpush.msra.mxu2 %v1029_v8 }
 0x1bc   : > { %1082 = vmatpush.msra.mxu0 %v1054_v9  ;;  %1106 = vmatpush.msra.mxu1 %v1043_v10 }
 0x1bd   : > { %1132 = vmatpush.msra.mxu2 %v1026_v12 }
 0x1be   : > { %1083 = vmatpush.msra.mxu0 %v1051_v14  ;;  %1107 = vmatpush.msra.mxu1 %v1040_v15 }
 0x1bf   : > { %1133 = vmatpush.msra.mxu2 %v1023_v18  ;;  %v464_v26 = vpop.permute.xlu0 %463  ;;  %v436_v30 = vpop.permute.xlu1 %435 }
 0x1c0   : > { %1108 = vmatpush.msra.mxu1 %v1037_v19  ;;  %1084 = vmatpush.msra.mxu0 %v1048_v23  ;;  %v468_v31 = vsel %vm467_vm6, %v2252_v50, %v464_v26  ;;  %v469_v34 = vsel %vm467_vm6, %v464_v26, %v2134_v3  ;;  %v442_v37 = vsel %vm441_vm5, %v436_v30, %v438_v61  ;;  %v1039_v3 = vld [vmem:[#allocation2 + $0xa8] sm:$0xff]  ;;  %v1030_v50 = vld [vmem:[#allocation2 + $0x60] sm:$0xff] }
 0x1c1   : > { %473 = vst [vmem:[#allocation2 + $0x30] sm:$0xf] %v468_v31  ;;  %1134 = vmatpush.msra.mxu2 %v1020_v35  ;;  %v1027_v29 = vld [vmem:[#allocation2 + $0x48] sm:$0xff] }
 0x1c2   : > { %474 = vst [vmem:[#allocation2 + $0x38] sm:$0xf] %v469_v34  ;;  %1085 = vmatpush.msra.mxu0 %v1045_v39  ;;  %1109 = vmatpush.msra.mxu1 %v1034_v41 }
 0x1c3   : > { %447 = vst [vmem:[#allocation2 + $0x18] sm:$0xf0] %v442_v37  ;;  %1322 = vmatmul.msk.f32.vlgmr.msra.gmra.mxu2 %vm494_vm11, %v1017_v38 }
 0x1c4   : > { %1086 = vmatpush.msra.mxu0 %v1042_v22  ;;  %1110 = vmatpush.msra.mxu1 %v1031_v42 }
 0x1c6   : > { %1087 = vmatpush.msra.mxu0 %v1039_v3  ;;  %1111 = vmatpush.msra.mxu1 %v1028_v43 }
 0x1c7   : > { %v411_v44 = vpop.permute.xlu0 %410 }
 0x1c8   : > { %v415_v46 = vsel %vm414_vm15, %v2118_v27, %v411_v44  ;;  %v416_v48 = vsel %vm414_vm15, %v411_v44, %v2093_v5  ;;  %1088 = vmatpush.msra.mxu0 %v1036_v45  ;;  %v1024_v24 = vld [vmem:[#allocation2 + $0x30] sm:$0xff]  ;;  %v1018_v5 = vld [vmem:[#allocation2] sm:$0xff] }
 0x1c9   : > { %420 = vst [vmem:[#allocation2 + $0x18] sm:$0xf] %v415_v46  ;;  %v1025_v49 = vld [vmem:[#allocation2 + $0x38] sm:$0xff] }
 0x1ca   : > { %421 = vst [vmem:[#allocation2 + $0x20] sm:$0xf] %v416_v48  ;;  %1089 = vmatpush.msra.mxu0 %v1033_v33  ;;  %1112 = vmatpush.msra.mxu1 %v1025_v49 }
 0x1cc   : > { %1090 = vmatpush.msra.mxu0 %v1030_v50 }
 0x1ce   : > { %1091 = vmatpush.msra.mxu0 %v1027_v29 }
 0x1d0   : > { %1092 = vmatpush.msra.mxu0 %v1024_v24  ;;  %v1021_v27 = vld [vmem:[#allocation2 + $0x18] sm:$0xff] }
 0x1d1   : > { %v1022_v32 = vld [vmem:[#allocation2 + $0x20] sm:$0xff] }
 0x1d2   : > { %1093 = vmatpush.msra.mxu0 %v1021_v27  ;;  %1113 = vmatpush.msra.mxu1 %v1022_v32 }
 0x1d4   : > { %1094 = vmatpush.msra.mxu0 %v1018_v5  ;;  %1114 = vmatpush.msra.mxu1 %v1019_v53 }
 0x1d5   : > { %1318 = vmatmul.msk.f32.vlgmr.msra.gmra.mxu0 %vm494_vm11, %v1017_v38  ;;  %1320 = vmatmul.msk.f32.vlgmr.msra.gmra.mxu1 %vm494_vm11, %v1017_v38 }
 0x1ec   : > { %v1064_v47 = vpop.permute.xlu0 %1063 }
 0x246   : > { %v1136_v51 = vpop.f32.mrf.mxu2 }
 0x247   : > { %v1137_v52 = vadd.f32 %v1136_v51, %v1064_v47 }
 0x249   : > { %vm1141_vm3 = vcmp.ge.f32.partialorder %v1137_v52, 0.0  ;;  %v1144_v20 = vmul.f32 0.1, %v1137_v52 }
 0x24b   : > { %v1147_v16 = vsel %vm1141_vm3, %v1137_v52, %v1144_v20 }
 0x24c   : > { %1151 = vst.msk [vmem:[%s351_s12 + $0x10] sm:$0xff] %vm1150_vm2, %v1147_v16 }
 0x252   : > { %v1096_v21 = vpop.f32.mrf.mxu0  ;;  %v1116_v54 = vpop.f32.mrf.mxu1 }
 0x253   : > { %v1097_v40 = vadd.f32 %v1096_v21, %v1064_v47  ;;  %v1117_v25 = vadd.f32 %v1116_v54, %v1064_v47 }
 0x255   : > { %vm1139_vm4 = vcmp.ge.f32.partialorder %v1097_v40, 0.0  ;;  %v1142_v55 = vmul.f32 0.1, %v1097_v40  ;;  %vm1140_vm6 = vcmp.ge.f32.partialorder %v1117_v25, 0.0  ;;  %v1143_v13 = vmul.f32 0.1, %v1117_v25 }
 0x257   : > { %v1145_v56 = vsel %vm1139_vm4, %v1097_v40, %v1142_v55  ;;  %v1146_v57 = vsel %vm1140_vm6, %v1117_v25, %v1143_v13 }
 0x258   : > { %1148 = vst [vmem:[%s351_s12] sm:$0xff] %v1145_v56 }
 0x259   : > { %1149 = vst [vmem:[%s351_s12 + $0x8] sm:$0xff] %v1146_v57 }
 0x25a   : > { %1600 = shalt.err (!%p1597_p11)
}
 0x25b   : > { %1343 = dma.vmem_to_hbm [thread:$0]  (%p1931_p12), %s1169_s8, 384, %s1171_s4, %s1153_s9  }
 0x25c PF: > { %p1360_p6 = scmp.ge.s32.totalorder %s1727_s6, 2  ;;  %s1182_s18 = sand.u32 1, %s1699_s24  }
 0x25d   : > { %s1183_s27 = scalar_lea.sflag [#allocation5], %s1182_s18 }
 0x25e   : > { %p1356_p5 = pnand %p1360_p6, %p1940_p3 }
 0x260   : > { %p1357_p13 = pneg %p1356_p5 }
 0x262   : > { %1670 = dma.done.wait (%p1357_p13), %s1183_s27, 384  }
 0x263   : > { %1672 = vsyncadd (%p1357_p13), %s1183_s27, 4294966912  ;;  %s24_s6 = sadd.s32 1, %s1727_s6   ;;  %s2402_s21 = sld [smem:[#allocation14_spill]] }
 0x264   : > { %p2307_p8 = scmp.ge.s32.totalorder %s24_s6, 18   ;;  %s2403_s27 = sld [smem:[#allocation17_spill]] }
 0x265   : > { %s2404_s16 = sld [smem:[#allocation18_spill]]  ;;  %s2407_s18 = smov %s1679_s19 }
 0x266   : > { %s2405_s29 = sld [smem:[#allocation19_spill]]  ;;  %s2408_s19 = smov %s1683_s20 }
 0x267   : > { %s2406_s30 = sld [smem:[#allocation20_spill]]  ;;  %s2409_s20 = smov %s1952_s0 }
 0x268   : > { %s2410_s22 = smov %s1695_s23  ;;  %s2411_s23 = smov %s1878_s28 }
 0x269   : > { %s2412_s24 = smov %s1703_s25  ;;  %s2413_s25 = smov %s1707_s26 }
 0x26a   : > { %s2414_s26 = smov %s1921_s3  ;;  %23 = sbr.rel (!%p2307_p8) target bundleno = 18 (0x12), region = 149 }
 0x26b   : > { %s2415_s28 = smov %s2404_s16 }
 0x26f   :  { %1189 = vsyncpa [#allocation4], 1 }
 0x270   :  { %1191 = vsyncpa [#allocation4 + $0x1], 1 }
 0x271   :  { %1192 = vsyncpa [#allocation7], 1 }
 0x272   :  { %1194 = vsyncpa [#allocation7 + $0x1], 1 }
 0x273   :  { %1195 = vsyncpa [#allocation5], 1 }
 0x274   :  { %1197 = vsyncpa [#allocation5 + $0x1], 1 }

</bundles_post_ra>
